<compile_context>
chip_gen: v6e
topology: v6e:2x2x1
jax: 0.10.0
libtpu: 0.0.40
codegen_flags: <defaults>
</compile_context>

<pallas_src>
import math
import jax
import jax.numpy as jnp
from jax.experimental import pallas as pl
from jax.experimental.pallas import tpu as pltpu

DICT_SIZE = 53 + 3 + 11  # 67


def _round_up(x, m):
    return ((x + m - 1) // m) * m


# ----------------------------------------------------------------------------
# Kernel
# ----------------------------------------------------------------------------
def actor_kernel(tok_ref, w1e_ref, wst_ref, bst_ref, out_ref):
    """One batch tile of the Actor forward.

    tok_ref : (TILE_B, I)   int32      token ids
    w1e_ref : (I*DP, P)     bf16/f32   embedding folded into layer-1 weights
    wst_ref : (5, P, P)     bf16/f32   [w2, w3, w4, w5, w_out]
    bst_ref : (6, 1, P)     f32        [b1, b2, b3, b4, b5, b_out]
    out_ref : (TILE_B, P)   f32/bf16   logits (padded lanes)
    """
    tb, num_pos = tok_ref.shape
    dp = w1e_ref.shape[0] // num_pos      # padded dictionary size (128)
    p = w1e_ref.shape[1]                  # padded hidden/action width (128)

    f32 = jnp.float32
    wdt = w1e_ref.dtype                   # matmul operand dtype (bf16 or f32)

    tok = tok_ref[...]                                            # (tb, I)
    col = jax.lax.broadcasted_iota(jnp.int32, (tb, dp), 1)        # (tb, 128)

    # Layer 1: embedding gather + flatten + Linear fused.  Per-position
    # 128-lane one-hot (exact in bf16) -> accumulating MXU dot against the
    # matching 128-row slice of the folded weight matrix.
    acc = jnp.zeros((tb, p), f32)
    for i in range(num_pos):              # static unroll, I is small
        oh = (col == tok[:, i:i + 1]).astype(wdt)                 # (tb, dp)
        acc = acc + jnp.dot(oh, w1e_ref[pl.ds(i * dp, dp), :],
                            preferred_element_type=f32)
    h1 = acc + bst_ref[0]
    x1 = jnp.maximum(h1, 0.0)

    def lin(x, wi, bi):
        # bf16 (or f32) operands, f32 accumulation; bias add in f32.
        return (jnp.dot(x.astype(wdt), wst_ref[wi],
                        preferred_element_type=f32) + bst_ref[bi])

    # Layer 2 pre-activation is reused by the skip connection.
    h2 = lin(x1, 0, 1)
    x2 = jnp.maximum(h2, 0.0)
    x3 = jnp.maximum(lin(x2, 1, 2), 0.0)
    x4 = jnp.maximum(lin(x3, 2, 3), 0.0)
    x5 = jnp.maximum(lin(x4, 3, 4) + h2, 0.0)       # relu(h5(x4) + h2(x1))

    out_ref[...] = lin(x5, 4, 5).astype(out_ref.dtype)


# ----------------------------------------------------------------------------
# Wrapper
# ----------------------------------------------------------------------------
def actor_forward_pallas(x_tokens, kparams, tile_b=None, out_dtype=jnp.float32):
    """x_tokens: (B, input_size) int32 token ids in [0, DICT_SIZE)."""
    B, I = x_tokens.shape
    P = kparams["w_stack"].shape[-1]
    n_actions = kparams["n_actions"]

    if tile_b is None:
        # Tiny batches: a single 8-sublane-aligned tile.  Large batches:
        # 256-row tiles (one full systolic pass on the 256-wide v6e/v7x MXUs;
        # even grid split for v7x's two TensorCores; also fills v5e's MXU).
        tile_b = _round_up(max(B, 1), 8) if B <= 128 else 256
    Bp = _round_up(B, tile_b)

    tok = x_tokens.astype(jnp.int32)
    if Bp != B:
        tok = jnp.pad(tok, ((0, Bp - B), (0, 0)))   # pad rows with token 0

    out = pl.pallas_call(
        actor_kernel,
        out_shape=jax.ShapeDtypeStruct((Bp, P), out_dtype),
        grid=(Bp // tile_b,),
        in_specs=[
            pl.BlockSpec((tile_b, I), lambda b: (b, 0)),
            # Weights/biases: constant index_maps -> fetched once, resident in
            # VMEM across all grid steps.
            pl.BlockSpec(kparams["w1e"].shape, lambda b: (0, 0)),
            pl.BlockSpec(kparams["w_stack"].shape, lambda b: (0, 0, 0)),
            pl.BlockSpec(kparams["b_stack"].shape, lambda b: (0, 0, 0)),
        ],
        out_specs=pl.BlockSpec((tile_b, P), lambda b: (b, 0)),
        compiler_params=pltpu.CompilerParams(
            dimension_semantics=("parallel",)),
    )(tok, kparams["w1e"], kparams["w_stack"], kparams["b_stack"])
    return out[:B, :n_actions]


# ----------------------------------------------------------------------------
# Parameter construction (PyTorch-equivalent layout) + kernel-layout prep
# ----------------------------------------------------------------------------
def _orthogonal(key, out_dim, in_dim, gain):
    """Mimics nn.init.orthogonal_ (shape (out, in)), returns transpose (in, out)."""
    a = jax.random.normal(key, (max(out_dim, in_dim), min(out_dim, in_dim)), jnp.float32)
    q, r = jnp.linalg.qr(a)
    q = q * jnp.sign(jnp.diag(r))[None, :]
    w = q if out_dim >= in_dim else q.T
    w = gain * w[:out_dim, :in_dim]          # (out, in) like PyTorch
    return w.T                                # stored as (in, out)


def _linear_default(key, out_dim, in_dim):
    """Default nn.Linear init, returned transposed (in, out)."""
    kw, kb = jax.random.split(key)
    bound = 1.0 / math.sqrt(in_dim)
    w = jax.random.uniform(kw, (out_dim, in_dim), jnp.float32, -bound, bound)
    b = jax.random.uniform(kb, (1, out_dim), jnp.float32, -bound, bound)
    return w.T, b


def make_params(key, input_size, hidden_size, n_actions, emb_size):
    keys = jax.random.split(key, 16)
    in_feat = input_size * emb_size
    params = {}
    params["embedding"] = jax.random.normal(keys[0], (DICT_SIZE, emb_size), jnp.float32)
    params["w1"] = _orthogonal(keys[1], hidden_size, in_feat, math.sqrt(2.0))
    _, params["b1"] = _linear_default(keys[2], hidden_size, in_feat)
    params["w2"] = _orthogonal(keys[3], hidden_size, hidden_size, math.sqrt(2.0))
    _, params["b2"] = _linear_default(keys[4], hidden_size, hidden_size)
    params["w3"] = _orthogonal(keys[5], hidden_size, hidden_size, math.sqrt(2.0))
    _, params["b3"] = _linear_default(keys[6], hidden_size, hidden_size)
    params["w4"], params["b4"] = _linear_default(keys[7], hidden_size, hidden_size)
    params["w5"], params["b5"] = _linear_default(keys[8], hidden_size, hidden_size)
    params["wo"] = _orthogonal(keys[9], n_actions, hidden_size, 0.01)
    _, params["bo"] = _linear_default(keys[10], n_actions, hidden_size)
    return params


def _pad2(a, rows, cols):
    return jnp.pad(a, ((0, rows - a.shape[0]), (0, cols - a.shape[1])))


def prepare_kernel_params(params, emb_size, weight_dtype=jnp.bfloat16):
    """Fold embedding into layer 1, lane-pad everything, stack operands.

    Matmul weights are stored in `weight_dtype` (bf16 by default for the
    bf16-native MXUs); biases stay f32 (bias add / ReLU / skip stay f32).
    """
    emb = params["embedding"]                       # (DICT_SIZE, E)
    w1 = params["w1"]                               # (I*E, H)
    E = emb_size
    I = w1.shape[0] // E
    H = w1.shape[1]
    n_actions = params["wo"].shape[1]

    DP = _round_up(DICT_SIZE, 128)                  # padded dict size (128)
    P = max(_round_up(H, 128), _round_up(n_actions, 128))  # padded lane width

    embp = jnp.pad(emb, ((0, DP - DICT_SIZE), (0, 0)))      # (DP, E)
    w1r = w1.reshape(I, E, H)
    # W1_eff[i, d, h] = sum_e emb[d, e] * w1[i*E+e, h]  -> gather == one-hot matmul
    w1e = jnp.einsum("de,ieh->idh", embp, w1r).reshape(I * DP, H)
    w1e = jnp.pad(w1e, ((0, 0), (0, P - H))).astype(weight_dtype)   # (I*DP, P)

    w_stack = jnp.stack([
        _pad2(params["w2"], P, P),
        _pad2(params["w3"], P, P),
        _pad2(params["w4"], P, P),
        _pad2(params["w5"], P, P),
        _pad2(params["wo"], P, P),
    ]).astype(weight_dtype)                                  # (5, P, P)
    b_stack = jnp.stack([
        _pad2(params["b1"], 1, P),
        _pad2(params["b2"], 1, P),
        _pad2(params["b3"], 1, P),
        _pad2(params["b4"], 1, P),
        _pad2(params["b5"], 1, P),
        _pad2(params["bo"], 1, P),
    ]).astype(jnp.float32)                                   # (6, 1, P)
    return {"w1e": w1e, "w_stack": w_stack, "b_stack": b_stack,
            "n_actions": n_actions}


# ----------------------------------------------------------------------------
# Pure-JAX reference (matches the PyTorch forward)
# ----------------------------------------------------------------------------
def actor_forward_ref(x_tokens, params):
    x = jnp.take(params["embedding"], x_tokens, axis=0).reshape(x_tokens.shape[0], -1)
    x1 = jax.nn.relu(x @ params["w1"] + params["b1"])
    h2 = x1 @ params["w2"] + params["b2"]
    x2 = jax.nn.relu(h2)
    x3 = jax.nn.relu(x2 @ params["w3"] + params["b3"])
    x4 = jax.nn.relu(x3 @ params["w4"] + params["b4"])
    x5 = jax.nn.relu(x4 @ params["w5"] + params["b5"] + h2)
    return x5 @ params["wo"] + params["bo"]


if __name__ == "__main__":
    key = jax.random.PRNGKey(0)
    B, input_size, hidden_size, n_actions, emb_size = 4, 8, 32, 6, 4

    k_tok, k_par, k_tok2 = jax.random.split(key, 3)
    x_tokens = jax.random.randint(k_tok, (B, input_size), 0, DICT_SIZE, dtype=jnp.int32)
    params = make_params(k_par, input_size, hidden_size, n_actions, emb_size)
    ref = actor_forward_ref(x_tokens, params)

    # Structure check: f32 weights, tight tolerance vs the pure-JAX reference.
    kparams_f32 = prepare_kernel_params(params, emb_size, weight_dtype=jnp.float32)
    out_f32 = jax.block_until_ready(actor_forward_pallas(x_tokens, kparams_f32))
    assert out_f32.shape == (B, n_actions)
    assert jnp.allclose(out_f32, ref, atol=1e-3, rtol=1e-3), "mismatch (f32 weights)"

    # Performance path: bf16 weights on the MXU, f32 accumulate / elementwise.
    kparams = prepare_kernel_params(params, emb_size)        # bf16 default
    out = jax.block_until_ready(actor_forward_pallas(x_tokens, kparams))
    assert out.shape == (B, n_actions)
    assert jnp.allclose(out, ref, atol=2e-2, rtol=2e-2), "mismatch (bf16, small B)"

    # Batched path: 256-row tiles -> 2-step parallel grid (balanced on v7x).
    B2 = 260
    x_tokens2 = jax.random.randint(k_tok2, (B2, input_size), 0, DICT_SIZE, dtype=jnp.int32)
    out2 = jax.block_until_ready(actor_forward_pallas(x_tokens2, kparams))
    ref2 = actor_forward_ref(x_tokens2, params)
    assert out2.shape == (B2, n_actions)
    assert jnp.allclose(out2, ref2, atol=2e-2, rtol=2e-2), "mismatch (bf16, batched)"

    # TODO(synk): pass out_dtype=jnp.bfloat16 if the consumer tolerates bf16
    # logits (halves the lane-padded writeback stream at large B).
    print("KERNEL_OK")
</pallas_src>

<mosaic_0001>
module attributes {stable_mosaic.version = 11 : i64} {
  func.func @actor_kernel(%arg0: i32, %arg1: memref<8x8xi32, #tpu.memory_space<vmem>>, %arg2: memref<1024x128xf32, #tpu.memory_space<vmem>>, %arg3: memref<5x128x128xf32, #tpu.memory_space<vmem>>, %arg4: memref<6x1x128xf32, #tpu.memory_space<vmem>>, %arg5: memref<8x128xf32, #tpu.memory_space<vmem>>) attributes {dimension_semantics = [#tpu.dimension_semantics<parallel>], iteration_bounds = array<i64: 1>, scalar_prefetch = 0 : i64, scratch_operands = 0 : i64, tpu.core_type = #tpu.core_type<tc>, window_params = [{transform_indices = @transform_0, window_bounds = array<i64: 8, 8>}, {pipeline_mode = #tpu.pipeline_mode<synchronous>, transform_indices = @transform_1, window_bounds = array<i64: 1024, 128>}, {pipeline_mode = #tpu.pipeline_mode<synchronous>, transform_indices = @transform_2, window_bounds = array<i64: 5, 128, 128>}, {pipeline_mode = #tpu.pipeline_mode<synchronous>, transform_indices = @transform_3, window_bounds = array<i64: 6, 1, 128>}, {transform_indices = @transform_4, window_bounds = array<i64: 8, 128>}]} {
    %c0 = arith.constant 0 : index
    %c0_0 = arith.constant 0 : index
    %0 = vector.load %arg1[%c0, %c0_0] : memref<8x8xi32, #tpu.memory_space<vmem>>, vector<8x8xi32>
    %1 = tpu.iota {dimensions = array<i32: 1>} : vector<8x128xi32>
    %cst = arith.constant 0.000000e+00 : f32
    %2 = vector.broadcast %cst : f32 to vector<8x128xf32>
    %3 = vector.extract_strided_slice %0 {offsets = [0, 0], sizes = [8, 1], strides = [1, 1]} : vector<8x8xi32> to vector<8x1xi32>
    %4 = vector.broadcast %3 : vector<8x1xi32> to vector<8x128xi32>
    %5 = arith.cmpi eq, %1, %4 : vector<8x128xi32>
    %6 = arith.extui %5 : vector<8x128xi1> to vector<8x128xi32>
    %7 = arith.sitofp %6 : vector<8x128xi32> to vector<8x128xf32>
    %c0_1 = arith.constant 0 : index
    %c0_2 = arith.constant 0 : index
    %8 = vector.load %arg2[%c0_1, %c0_2] : memref<1024x128xf32, #tpu.memory_space<vmem>>, vector<128x128xf32>
    %cst_3 = arith.constant dense<0.000000e+00> : vector<8x128xf32>
    %9 = tpu.matmul %7, %8, %cst_3 {dimension_numbers = #tpu.dot_dimension_numbers<[1], [0], [0], [1], [0, 0, 1, 1], [], []>} : vector<8x128xf32>, vector<128x128xf32>, vector<8x128xf32> -> vector<8x128xf32>
    %10 = arith.addf %2, %9 : vector<8x128xf32>
    %11 = vector.extract_strided_slice %0 {offsets = [0, 1], sizes = [8, 1], strides = [1, 1]} : vector<8x8xi32> to vector<8x1xi32>
    %12 = vector.broadcast %11 : vector<8x1xi32> to vector<8x128xi32>
    %13 = arith.cmpi eq, %1, %12 : vector<8x128xi32>
    %14 = arith.extui %13 : vector<8x128xi1> to vector<8x128xi32>
    %15 = arith.sitofp %14 : vector<8x128xi32> to vector<8x128xf32>
    %c128 = arith.constant 128 : index
    %c0_4 = arith.constant 0 : index
    %16 = vector.load %arg2[%c128, %c0_4] : memref<1024x128xf32, #tpu.memory_space<vmem>>, vector<128x128xf32>
    %cst_5 = arith.constant dense<0.000000e+00> : vector<8x128xf32>
    %17 = tpu.matmul %15, %16, %cst_5 {dimension_numbers = #tpu.dot_dimension_numbers<[1], [0], [0], [1], [0, 0, 1, 1], [], []>} : vector<8x128xf32>, vector<128x128xf32>, vector<8x128xf32> -> vector<8x128xf32>
    %18 = arith.addf %10, %17 : vector<8x128xf32>
    %19 = vector.extract_strided_slice %0 {offsets = [0, 2], sizes = [8, 1], strides = [1, 1]} : vector<8x8xi32> to vector<8x1xi32>
    %20 = vector.broadcast %19 : vector<8x1xi32> to vector<8x128xi32>
    %21 = arith.cmpi eq, %1, %20 : vector<8x128xi32>
    %22 = arith.extui %21 : vector<8x128xi1> to vector<8x128xi32>
    %23 = arith.sitofp %22 : vector<8x128xi32> to vector<8x128xf32>
    %c256 = arith.constant 256 : index
    %c0_6 = arith.constant 0 : index
    %24 = vector.load %arg2[%c256, %c0_6] : memref<1024x128xf32, #tpu.memory_space<vmem>>, vector<128x128xf32>
    %cst_7 = arith.constant dense<0.000000e+00> : vector<8x128xf32>
    %25 = tpu.matmul %23, %24, %cst_7 {dimension_numbers = #tpu.dot_dimension_numbers<[1], [0], [0], [1], [0, 0, 1, 1], [], []>} : vector<8x128xf32>, vector<128x128xf32>, vector<8x128xf32> -> vector<8x128xf32>
    %26 = arith.addf %18, %25 : vector<8x128xf32>
    %27 = vector.extract_strided_slice %0 {offsets = [0, 3], sizes = [8, 1], strides = [1, 1]} : vector<8x8xi32> to vector<8x1xi32>
    %28 = vector.broadcast %27 : vector<8x1xi32> to vector<8x128xi32>
    %29 = arith.cmpi eq, %1, %28 : vector<8x128xi32>
    %30 = arith.extui %29 : vector<8x128xi1> to vector<8x128xi32>
    %31 = arith.sitofp %30 : vector<8x128xi32> to vector<8x128xf32>
    %c384 = arith.constant 384 : index
    %c0_8 = arith.constant 0 : index
    %32 = vector.load %arg2[%c384, %c0_8] : memref<1024x128xf32, #tpu.memory_space<vmem>>, vector<128x128xf32>
    %cst_9 = arith.constant dense<0.000000e+00> : vector<8x128xf32>
    %33 = tpu.matmul %31, %32, %cst_9 {dimension_numbers = #tpu.dot_dimension_numbers<[1], [0], [0], [1], [0, 0, 1, 1], [], []>} : vector<8x128xf32>, vector<128x128xf32>, vector<8x128xf32> -> vector<8x128xf32>
    %34 = arith.addf %26, %33 : vector<8x128xf32>
    %35 = vector.extract_strided_slice %0 {offsets = [0, 4], sizes = [8, 1], strides = [1, 1]} : vector<8x8xi32> to vector<8x1xi32>
    %36 = vector.broadcast %35 : vector<8x1xi32> to vector<8x128xi32>
    %37 = arith.cmpi eq, %1, %36 : vector<8x128xi32>
    %38 = arith.extui %37 : vector<8x128xi1> to vector<8x128xi32>
    %39 = arith.sitofp %38 : vector<8x128xi32> to vector<8x128xf32>
    %c512 = arith.constant 512 : index
    %c0_10 = arith.constant 0 : index
    %40 = vector.load %arg2[%c512, %c0_10] : memref<1024x128xf32, #tpu.memory_space<vmem>>, vector<128x128xf32>
    %cst_11 = arith.constant dense<0.000000e+00> : vector<8x128xf32>
    %41 = tpu.matmul %39, %40, %cst_11 {dimension_numbers = #tpu.dot_dimension_numbers<[1], [0], [0], [1], [0, 0, 1, 1], [], []>} : vector<8x128xf32>, vector<128x128xf32>, vector<8x128xf32> -> vector<8x128xf32>
    %42 = arith.addf %34, %41 : vector<8x128xf32>
    %43 = vector.extract_strided_slice %0 {offsets = [0, 5], sizes = [8, 1], strides = [1, 1]} : vector<8x8xi32> to vector<8x1xi32>
    %44 = vector.broadcast %43 : vector<8x1xi32> to vector<8x128xi32>
    %45 = arith.cmpi eq, %1, %44 : vector<8x128xi32>
    %46 = arith.extui %45 : vector<8x128xi1> to vector<8x128xi32>
    %47 = arith.sitofp %46 : vector<8x128xi32> to vector<8x128xf32>
    %c640 = arith.constant 640 : index
    %c0_12 = arith.constant 0 : index
    %48 = vector.load %arg2[%c640, %c0_12] : memref<1024x128xf32, #tpu.memory_space<vmem>>, vector<128x128xf32>
    %cst_13 = arith.constant dense<0.000000e+00> : vector<8x128xf32>
    %49 = tpu.matmul %47, %48, %cst_13 {dimension_numbers = #tpu.dot_dimension_numbers<[1], [0], [0], [1], [0, 0, 1, 1], [], []>} : vector<8x128xf32>, vector<128x128xf32>, vector<8x128xf32> -> vector<8x128xf32>
    %50 = arith.addf %42, %49 : vector<8x128xf32>
    %51 = vector.extract_strided_slice %0 {offsets = [0, 6], sizes = [8, 1], strides = [1, 1]} : vector<8x8xi32> to vector<8x1xi32>
    %52 = vector.broadcast %51 : vector<8x1xi32> to vector<8x128xi32>
    %53 = arith.cmpi eq, %1, %52 : vector<8x128xi32>
    %54 = arith.extui %53 : vector<8x128xi1> to vector<8x128xi32>
    %55 = arith.sitofp %54 : vector<8x128xi32> to vector<8x128xf32>
    %c768 = arith.constant 768 : index
    %c0_14 = arith.constant 0 : index
    %56 = vector.load %arg2[%c768, %c0_14] : memref<1024x128xf32, #tpu.memory_space<vmem>>, vector<128x128xf32>
    %cst_15 = arith.constant dense<0.000000e+00> : vector<8x128xf32>
    %57 = tpu.matmul %55, %56, %cst_15 {dimension_numbers = #tpu.dot_dimension_numbers<[1], [0], [0], [1], [0, 0, 1, 1], [], []>} : vector<8x128xf32>, vector<128x128xf32>, vector<8x128xf32> -> vector<8x128xf32>
    %58 = arith.addf %50, %57 : vector<8x128xf32>
    %59 = vector.extract_strided_slice %0 {offsets = [0, 7], sizes = [8, 1], strides = [1, 1]} : vector<8x8xi32> to vector<8x1xi32>
    %60 = vector.broadcast %59 : vector<8x1xi32> to vector<8x128xi32>
    %61 = arith.cmpi eq, %1, %60 : vector<8x128xi32>
    %62 = arith.extui %61 : vector<8x128xi1> to vector<8x128xi32>
    %63 = arith.sitofp %62 : vector<8x128xi32> to vector<8x128xf32>
    %c896 = arith.constant 896 : index
    %c0_16 = arith.constant 0 : index
    %64 = vector.load %arg2[%c896, %c0_16] : memref<1024x128xf32, #tpu.memory_space<vmem>>, vector<128x128xf32>
    %cst_17 = arith.constant dense<0.000000e+00> : vector<8x128xf32>
    %65 = tpu.matmul %63, %64, %cst_17 {dimension_numbers = #tpu.dot_dimension_numbers<[1], [0], [0], [1], [0, 0, 1, 1], [], []>} : vector<8x128xf32>, vector<128x128xf32>, vector<8x128xf32> -> vector<8x128xf32>
    %66 = arith.addf %58, %65 : vector<8x128xf32>
    %c0_18 = arith.constant 0 : index
    %c0_19 = arith.constant 0 : index
    %c0_20 = arith.constant 0 : index
    %67 = vector.load %arg4[%c0_18, %c0_19, %c0_20] : memref<6x1x128xf32, #tpu.memory_space<vmem>>, vector<1x1x128xf32>
    %68 = vector.shape_cast %67 : vector<1x1x128xf32> to vector<1x128xf32>
    %69 = vector.broadcast %68 : vector<1x128xf32> to vector<8x128xf32>
    %70 = arith.addf %66, %69 : vector<8x128xf32>
    %cst_21 = arith.constant 0.000000e+00 : f32
    %71 = vector.broadcast %cst_21 : f32 to vector<8x128xf32>
    %72 = arith.maximumf %70, %71 : vector<8x128xf32>
    %c0_22 = arith.constant 0 : index
    %c0_23 = arith.constant 0 : index
    %c0_24 = arith.constant 0 : index
    %73 = vector.load %arg3[%c0_22, %c0_23, %c0_24] : memref<5x128x128xf32, #tpu.memory_space<vmem>>, vector<1x128x128xf32>
    %74 = vector.shape_cast %73 : vector<1x128x128xf32> to vector<128x128xf32>
    %cst_25 = arith.constant dense<0.000000e+00> : vector<8x128xf32>
    %75 = tpu.matmul %72, %74, %cst_25 {dimension_numbers = #tpu.dot_dimension_numbers<[1], [0], [0], [1], [0, 0, 1, 1], [], []>} : vector<8x128xf32>, vector<128x128xf32>, vector<8x128xf32> -> vector<8x128xf32>
    %c1 = arith.constant 1 : index
    %c0_26 = arith.constant 0 : index
    %c0_27 = arith.constant 0 : index
    %76 = vector.load %arg4[%c1, %c0_26, %c0_27] : memref<6x1x128xf32, #tpu.memory_space<vmem>>, vector<1x1x128xf32>
    %77 = vector.shape_cast %76 : vector<1x1x128xf32> to vector<1x128xf32>
    %78 = vector.broadcast %77 : vector<1x128xf32> to vector<8x128xf32>
    %79 = arith.addf %75, %78 : vector<8x128xf32>
    %cst_28 = arith.constant 0.000000e+00 : f32
    %80 = vector.broadcast %cst_28 : f32 to vector<8x128xf32>
    %81 = arith.maximumf %79, %80 : vector<8x128xf32>
    %c1_29 = arith.constant 1 : index
    %c0_30 = arith.constant 0 : index
    %c0_31 = arith.constant 0 : index
    %82 = vector.load %arg3[%c1_29, %c0_30, %c0_31] : memref<5x128x128xf32, #tpu.memory_space<vmem>>, vector<1x128x128xf32>
    %83 = vector.shape_cast %82 : vector<1x128x128xf32> to vector<128x128xf32>
    %cst_32 = arith.constant dense<0.000000e+00> : vector<8x128xf32>
    %84 = tpu.matmul %81, %83, %cst_32 {dimension_numbers = #tpu.dot_dimension_numbers<[1], [0], [0], [1], [0, 0, 1, 1], [], []>} : vector<8x128xf32>, vector<128x128xf32>, vector<8x128xf32> -> vector<8x128xf32>
    %c2 = arith.constant 2 : index
    %c0_33 = arith.constant 0 : index
    %c0_34 = arith.constant 0 : index
    %85 = vector.load %arg4[%c2, %c0_33, %c0_34] : memref<6x1x128xf32, #tpu.memory_space<vmem>>, vector<1x1x128xf32>
    %86 = vector.shape_cast %85 : vector<1x1x128xf32> to vector<1x128xf32>
    %87 = vector.broadcast %86 : vector<1x128xf32> to vector<8x128xf32>
    %88 = arith.addf %84, %87 : vector<8x128xf32>
    %cst_35 = arith.constant 0.000000e+00 : f32
    %89 = vector.broadcast %cst_35 : f32 to vector<8x128xf32>
    %90 = arith.maximumf %88, %89 : vector<8x128xf32>
    %c2_36 = arith.constant 2 : index
    %c0_37 = arith.constant 0 : index
    %c0_38 = arith.constant 0 : index
    %91 = vector.load %arg3[%c2_36, %c0_37, %c0_38] : memref<5x128x128xf32, #tpu.memory_space<vmem>>, vector<1x128x128xf32>
    %92 = vector.shape_cast %91 : vector<1x128x128xf32> to vector<128x128xf32>
    %cst_39 = arith.constant dense<0.000000e+00> : vector<8x128xf32>
    %93 = tpu.matmul %90, %92, %cst_39 {dimension_numbers = #tpu.dot_dimension_numbers<[1], [0], [0], [1], [0, 0, 1, 1], [], []>} : vector<8x128xf32>, vector<128x128xf32>, vector<8x128xf32> -> vector<8x128xf32>
    %c3 = arith.constant 3 : index
    %c0_40 = arith.constant 0 : index
    %c0_41 = arith.constant 0 : index
    %94 = vector.load %arg4[%c3, %c0_40, %c0_41] : memref<6x1x128xf32, #tpu.memory_space<vmem>>, vector<1x1x128xf32>
    %95 = vector.shape_cast %94 : vector<1x1x128xf32> to vector<1x128xf32>
    %96 = vector.broadcast %95 : vector<1x128xf32> to vector<8x128xf32>
    %97 = arith.addf %93, %96 : vector<8x128xf32>
    %cst_42 = arith.constant 0.000000e+00 : f32
    %98 = vector.broadcast %cst_42 : f32 to vector<8x128xf32>
    %99 = arith.maximumf %97, %98 : vector<8x128xf32>
    %c3_43 = arith.constant 3 : index
    %c0_44 = arith.constant 0 : index
    %c0_45 = arith.constant 0 : index
    %100 = vector.load %arg3[%c3_43, %c0_44, %c0_45] : memref<5x128x128xf32, #tpu.memory_space<vmem>>, vector<1x128x128xf32>
    %101 = vector.shape_cast %100 : vector<1x128x128xf32> to vector<128x128xf32>
    %cst_46 = arith.constant dense<0.000000e+00> : vector<8x128xf32>
    %102 = tpu.matmul %99, %101, %cst_46 {dimension_numbers = #tpu.dot_dimension_numbers<[1], [0], [0], [1], [0, 0, 1, 1], [], []>} : vector<8x128xf32>, vector<128x128xf32>, vector<8x128xf32> -> vector<8x128xf32>
    %c4 = arith.constant 4 : index
    %c0_47 = arith.constant 0 : index
    %c0_48 = arith.constant 0 : index
    %103 = vector.load %arg4[%c4, %c0_47, %c0_48] : memref<6x1x128xf32, #tpu.memory_space<vmem>>, vector<1x1x128xf32>
    %104 = vector.shape_cast %103 : vector<1x1x128xf32> to vector<1x128xf32>
    %105 = vector.broadcast %104 : vector<1x128xf32> to vector<8x128xf32>
    %106 = arith.addf %102, %105 : vector<8x128xf32>
    %107 = arith.addf %106, %79 : vector<8x128xf32>
    %cst_49 = arith.constant 0.000000e+00 : f32
    %108 = vector.broadcast %cst_49 : f32 to vector<8x128xf32>
    %109 = arith.maximumf %107, %108 : vector<8x128xf32>
    %c4_50 = arith.constant 4 : index
    %c0_51 = arith.constant 0 : index
    %c0_52 = arith.constant 0 : index
    %110 = vector.load %arg3[%c4_50, %c0_51, %c0_52] : memref<5x128x128xf32, #tpu.memory_space<vmem>>, vector<1x128x128xf32>
    %111 = vector.shape_cast %110 : vector<1x128x128xf32> to vector<128x128xf32>
    %cst_53 = arith.constant dense<0.000000e+00> : vector<8x128xf32>
    %112 = tpu.matmul %109, %111, %cst_53 {dimension_numbers = #tpu.dot_dimension_numbers<[1], [0], [0], [1], [0, 0, 1, 1], [], []>} : vector<8x128xf32>, vector<128x128xf32>, vector<8x128xf32> -> vector<8x128xf32>
    %c5 = arith.constant 5 : index
    %c0_54 = arith.constant 0 : index
    %c0_55 = arith.constant 0 : index
    %113 = vector.load %arg4[%c5, %c0_54, %c0_55] : memref<6x1x128xf32, #tpu.memory_space<vmem>>, vector<1x1x128xf32>
    %114 = vector.shape_cast %113 : vector<1x1x128xf32> to vector<1x128xf32>
    %115 = vector.broadcast %114 : vector<1x128xf32> to vector<8x128xf32>
    %116 = arith.addf %112, %115 : vector<8x128xf32>
    %c0_56 = arith.constant 0 : index
    %c0_57 = arith.constant 0 : index
    %117 = vector.load %arg5[%c0_56, %c0_57] : memref<8x128xf32, #tpu.memory_space<vmem>>, vector<8x128xf32>
    tpu.vector_store %arg5[%c0_56, %c0_57], %116 {strides = array<i32>} : memref<8x128xf32, #tpu.memory_space<vmem>>, vector<8x128xf32>,
    return
  }
  func.func @transform_0(%arg0: i32) -> (i32, i32) {
    %c0_i32 = arith.constant 0 : i32
    %c0_i32_0 = arith.constant 0 : i32
    return %arg0, %c0_i32 : i32, i32
  }
  func.func @transform_1(%arg0: i32) -> (i32, i32) {
    %c0_i32 = arith.constant 0 : i32
    %c0_i32_0 = arith.constant 0 : i32
    %c0_i32_1 = arith.constant 0 : i32
    return %c0_i32, %c0_i32_0 : i32, i32
  }
  func.func @transform_2(%arg0: i32) -> (i32, i32, i32) {
    %c0_i32 = arith.constant 0 : i32
    %c0_i32_0 = arith.constant 0 : i32
    %c0_i32_1 = arith.constant 0 : i32
    %c0_i32_2 = arith.constant 0 : i32
    return %c0_i32, %c0_i32_0, %c0_i32_1 : i32, i32, i32
  }
  func.func @transform_3(%arg0: i32) -> (i32, i32, i32) {
    %c0_i32 = arith.constant 0 : i32
    %c0_i32_0 = arith.constant 0 : i32
    %c0_i32_1 = arith.constant 0 : i32
    %c0_i32_2 = arith.constant 0 : i32
    return %c0_i32, %c0_i32_0, %c0_i32_1 : i32, i32, i32
  }
  func.func @transform_4(%arg0: i32) -> (i32, i32) {
    %c0_i32 = arith.constant 0 : i32
    %c0_i32_0 = arith.constant 0 : i32
    return %arg0, %c0_i32 : i32, i32
  }
}

</mosaic_0001>

<bundles_post_ra>
// kernel: tpu_custom_call.1
= control target key start
LH: loop header
LB: loop body
LE: loop exit
PB: predicated region body
PF: predicated region fallthrough
CT: control target
= control target key end

     0   :  { %9 = vsyncpa [#allocation3], 0  ;;  %s2473_s0 = inlined_call_operand.hbm [shape: s32[8,8], index: 0, kind: input, shape index: {}]   ;;  %s2474_s1 = inlined_call_operand.hbm [shape: f32[1024,128], index: 1, kind: input, shape index: {}]   ;;  %s2475_s2 = inlined_call_operand.hbm [shape: f32[5,128,128], index: 2, kind: input, shape index: {}]   ;;  %s2476_s3 = inlined_call_operand.hbm [shape: f32[6,1,128], index: 3, kind: input, shape index: {}]   ;;  %s2477_s4 = inlined_call_operand.hbm [shape: f32[8,128], index: 4, kind: output, shape index: {}]  }
   0x1   :  { %10 = vsyncpa [#allocation6], 0 }
   0x2   :  { %11 = vsyncpa [#allocation9], 0 }
   0x3   :  { %12 = vsyncpa [#allocation4], 0  ;;  %s2157_s15 = smov [#allocation5]  }
   0x4   :  { %s28_s16 = sshll.u32 %s2157_s15, 4  ;;  %s29_s16 = int_to_ptr.vmem [resolvable:$true] %s28_s16 }
   0x5   :  { %s2057_s17 = scalar_lea.vmem %s29_s16, 16384  ;;  %p2062_p1 = scmp.lt.s32.totalorder %s29_s16, %s29_s16 }
   0x6   :  { %p2058_p0 = scmp.ne.s32.totalorder %s29_s16, %s2057_s17  ;;  %p2063_p2 = scmp.lt.s32.totalorder %s2057_s17, %s2057_s17 }
   0x8   :  { %p2064_p3 = por %p2063_p2, %p2062_p1 }
   0xa   :  { %p2065_p4 = pnand %p2064_p3, %p2058_p0 }
   0xc   :  { %2068 = shalt.err (!%p2065_p4)
}
   0xd   :  { %s2158_s18 = smov 128   ;;  %s2159_s19 = smov 8  }
   0xe   :  { %34 = dma.hbm_to_vmem [thread:$0]  %s2474_s1, 16384, %s29_s16, [#allocation6], %s2158_s18, %s2158_s18, %s2159_s19  }
   0xf   :  { %s2160_s22 = smov [#allocation2]   ;;  %s2161_s24 = smov [#allocation7]  }
  0x10   :  { %s19_s23 = sshll.u32 %s2160_s22, 4  ;;  %s40_s25 = sshll.u32 %s2161_s24, 4  ;;  %s20_s23 = int_to_ptr.vmem [resolvable:$true] %s19_s23  ;;  %s41_s25 = int_to_ptr.vmem [resolvable:$true] %s40_s25 }
  0x11   :  { %s2077_s26 = scalar_lea.vmem %s20_s23, 128  ;;  %p2082_p6 = scmp.lt.s32.totalorder %s20_s23, %s20_s23 }
  0x12   :  { %p2078_p5 = scmp.ne.s32.totalorder %s20_s23, %s2077_s26  ;;  %p2083_p7 = scmp.lt.s32.totalorder %s2077_s26, %s2077_s26 }
  0x14   :  { %p2084_p8 = por %p2083_p7, %p2082_p6 }
  0x16   :  { %p2085_p9 = pnand %p2084_p8, %p2078_p5 }
  0x18   :  { %2088 = shalt.err (!%p2085_p9)
}
  0x19   :  { %22 = dma.hbm_to_vmem [thread:$0]  %s2473_s0, 128, %s20_s23, [#allocation3]  }
  0x1a   :  { %s2097_s29 = scalar_lea.vmem %s41_s25, 10240  ;;  %p2102_p11 = scmp.lt.s32.totalorder %s41_s25, %s41_s25 }
  0x1b   :  { %p2098_p10 = scmp.ne.s32.totalorder %s41_s25, %s2097_s29  ;;  %p2103_p12 = scmp.lt.s32.totalorder %s2097_s29, %s2097_s29 }
  0x1d   :  { %p2104_p13 = por %p2103_p12, %p2102_p11 }
  0x1f   :  { %p2105_p0 = pnand %p2104_p13, %p2098_p10 }
  0x21   :  { %2108 = shalt.err (!%p2105_p0)
}
  0x22   :  { %46 = dma.hbm_to_vmem [thread:$0]  %s2475_s2, 10240, %s41_s25, [#allocation6], %s2158_s18, %s2158_s18, %s2159_s19  }
  0x23   :  { %s2162_s5 = smov [#allocation8]  }
  0x24   :  { %s52_s6 = sshll.u32 %s2162_s5, 4  ;;  %s53_s6 = int_to_ptr.vmem [resolvable:$true] %s52_s6 }
  0x25   :  { %s2117_s7 = scalar_lea.vmem %s53_s6, 96  ;;  %p2122_p2 = scmp.lt.s32.totalorder %s53_s6, %s53_s6 }
  0x26   :  { %p2118_p1 = scmp.ne.s32.totalorder %s53_s6, %s2117_s7  ;;  %p2123_p3 = scmp.lt.s32.totalorder %s2117_s7, %s2117_s7 }
  0x28   :  { %p2124_p4 = por %p2123_p3, %p2122_p2 }
  0x2a   :  { %p2125_p5 = pnand %p2124_p4, %p2118_p1 }
  0x2c   :  { %2128 = shalt.err (!%p2125_p5)
}
  0x2d   :  { %s2163_s0 = smov 16   ;;  %s2164_s8 = smov 1  }
  0x2e   :  { %58 = dma.hbm_to_vmem [thread:$0]  %s2476_s3, 96, %s53_s6, [#allocation9], %s2163_s0, %s2163_s0, %s2164_s8  }
  0x2f   :  { %2149 = dma.done.wait [#allocation3], 128  }
  0x30   :  { %2150 = vsyncadd [#allocation3], 4294967168 }
  0x31   :  { %2151 = dma.done.wait [#allocation6], 26624  }
  0x32   :  { %2152 = vsyncadd [#allocation6], 4294940672 }
  0x33   :  { %2153 = dma.done.wait [#allocation9], 96  }
  0x34   :  { %2154 = vsyncadd [#allocation9], 4294967200  ;;  %v2165_v0 = vmov 1   ;;  %v2166_v1 = vmov 2   ;;  %v2167_v2 = vmov 0.0   ;;  %vm2168_vm0 = vmmov 0  }
  0x35   :  { %2040 = vset.pattern.permute.xlu0 %v2165_v0  ;;  %2042 = vset.pattern.permute.xlu1 %v2166_v1  ;;  %v71_v3 = vld [vmem:[#allocation2] sm:$0xff]  ;;  %v116_v5 = vld [vmem:[#allocation5 + $0xf0] sm:$0xff]  ;;  %v2169_v8 = vmov 0   ;;  %v2170_v9 = vmov 3   ;;  %v115_v10 = vld [vmem:[#allocation5 + $0xe8] sm:$0xff]  ;;  %v2171_v14 = vmov 4   ;;  %v72_v42 = vlaneseq }
  0x36   :  { %1565 = vmatprep.subr.mxu0 %v2167_v2  ;;  %1600 = vmatprep.subr.mxu1 %v2167_v2  ;;  %v117_v4 = vld [vmem:[#allocation5 + $0xf8] sm:$0xff]  ;;  %v94_v7 = vld [vmem:[#allocation5 + $0x70] sm:$0xff]  ;;  %v93_v11 = vld [vmem:[#allocation5 + $0x68] sm:$0xff]  ;;  %v2172_v15 = vmov 5   ;;  %v2173_v19 = vmov 6   ;;  %v2174_v25 = vmov 7  }
  0x37   :  { %1597 = vmatprep.mubr.msk.f32.mxu0 %vm2168_vm0, %v2167_v2  ;;  %1632 = vmatprep.mubr.msk.f32.mxu1 %vm2168_vm0, %v2167_v2  ;;  %v95_v6 = vld [vmem:[#allocation5 + $0x78] sm:$0xff]  ;;  %v114_v12 = vld [vmem:[#allocation5 + $0xe0] sm:$0xff]  ;;  %v112_v18 = vld [vmem:[#allocation5 + $0xd0] sm:$0xff]  ;;  %v2252_v43 = vand.u32 127, %v72_v42  ;;  %v2175_v46 = vmov 1.0   ;;  %s2176_s2 = smov [#allocation10]  }
  0x38   :  { %97 = vperm.xlu0 %2040, %v71_v3   ;;  %259 = vperm.xlu1 %2042, %v71_v3   ;;  %v92_v13 = vld [vmem:[#allocation5 + $0x60] sm:$0xff]  ;;  %v113_v16 = vld [vmem:[#allocation5 + $0xd8] sm:$0xff]  ;;  %v111_v20 = vld [vmem:[#allocation5 + $0xc8] sm:$0xff]  ;;  %s1311_s3 = sshll.u32 %s2176_s2, 4  ;;  %s1312_s3 = int_to_ptr.vmem [resolvable:$true] %s1311_s3 }
  0x39   :  { %1566 = vmatpush3.msra.mxu0 %v117_v4  ;;  %1601 = vmatpush3.msra.mxu1 %v95_v6  ;;  %v91_v17 = vld [vmem:[#allocation5 + $0x58] sm:$0xff]  ;;  %v90_v21 = vld [vmem:[#allocation5 + $0x50] sm:$0xff]  ;;  %v110_v22 = vld [vmem:[#allocation5 + $0xc0] sm:$0xff]  ;;  %s2129_s11 = scalar_lea.vmem %s1312_s3, 128  ;;  %p2134_p7 = scmp.lt.s32.totalorder %s1312_s3, %s1312_s3 }
  0x3a   :  { %1567 = vmatprep.subr.mxu0 %v2167_v2  ;;  %1602 = vmatprep.subr.mxu1 %v2167_v2  ;;  %v109_v23 = vld [vmem:[#allocation5 + $0xb8] sm:$0xff]  ;;  %v89_v24 = vld [vmem:[#allocation5 + $0x48] sm:$0xff]  ;;  %v108_v26 = vld [vmem:[#allocation5 + $0xb0] sm:$0xff]  ;;  %p2130_p6 = scmp.ne.s32.totalorder %s1312_s3, %s2129_s11  ;;  %p2135_p8 = scmp.lt.s32.totalorder %s2129_s11, %s2129_s11 }
  0x3b   :  { %1568 = vmatpush3.msra.mxu0 %v116_v5  ;;  %1603 = vmatpush3.msra.mxu1 %v94_v7  ;;  %v88_v27 = vld [vmem:[#allocation5 + $0x40] sm:$0xff]  ;;  %v107_v28 = vld [vmem:[#allocation5 + $0xa8] sm:$0xff]  ;;  %v87_v29 = vld [vmem:[#allocation5 + $0x38] sm:$0xff] }
  0x3c   :  { %2041 = vset.pattern.permute.xlu0 %v2169_v8  ;;  %2043 = vset.pattern.permute.xlu1 %v2170_v9  ;;  %v106_v30 = vld [vmem:[#allocation5 + $0xa0] sm:$0xff]  ;;  %v86_v31 = vld [vmem:[#allocation5 + $0x30] sm:$0xff]  ;;  %v105_v32 = vld [vmem:[#allocation5 + $0x98] sm:$0xff]  ;;  %p2136_p9 = por %p2135_p8, %p2134_p7 }
  0x3d   :  { %75 = vperm.xlu0 %2041, %v71_v3   ;;  %352 = vperm.xlu1 %2043, %v71_v3   ;;  %v85_v33 = vld [vmem:[#allocation5 + $0x28] sm:$0xff]  ;;  %v104_v34 = vld [vmem:[#allocation5 + $0x90] sm:$0xff]  ;;  %v84_v35 = vld [vmem:[#allocation5 + $0x20] sm:$0xff] }
  0x3e   :  { %1569 = vmatprep.subr.mxu0 %v2167_v2  ;;  %1604 = vmatprep.subr.mxu1 %v2167_v2  ;;  %v103_v36 = vld [vmem:[#allocation5 + $0x88] sm:$0xff]  ;;  %v83_v37 = vld [vmem:[#allocation5 + $0x18] sm:$0xff]  ;;  %v102_v38 = vld [vmem:[#allocation5 + $0x80] sm:$0xff]  ;;  %p2137_p10 = pnand %p2136_p9, %p2130_p6 }
  0x3f   :  { %1570 = vmatpush3.msra.mxu0 %v115_v10  ;;  %1605 = vmatpush3.msra.mxu1 %v93_v11  ;;  %v82_v39 = vld [vmem:[#allocation5 + $0x10] sm:$0xff]  ;;  %v81_v40 = vld [vmem:[#allocation5 + $0x8] sm:$0xff]  ;;  %v80_v41 = vld [vmem:[#allocation5] sm:$0xff] }
  0x40   :  { %1571 = vmatprep.subr.mxu0 %v2167_v2  ;;  %1606 = vmatprep.subr.mxu1 %v2167_v2  ;;  %v279_v45 = vld [vmem:[#allocation5 + $0x178] sm:$0xff]  ;;  %v278_v47 = vld [vmem:[#allocation5 + $0x170] sm:$0xff]  ;;  %v277_v48 = vld [vmem:[#allocation5 + $0x168] sm:$0xff] }
  0x41   :  { %2044 = vset.pattern.permute.xlu1 %v2171_v14  ;;  %2045 = vset.pattern.permute.xlu0 %v2172_v15  ;;  %v372_v50 = vld [vmem:[#allocation5 + $0x1f8] sm:$0xff]  ;;  %v276_v51 = vld [vmem:[#allocation5 + $0x160] sm:$0xff]  ;;  %v371_v52 = vld [vmem:[#allocation5 + $0x1f0] sm:$0xff] }
  0x42   :  { %445 = vperm.xlu1 %2044, %v71_v3   ;;  %538 = vperm.xlu0 %2045, %v71_v3   ;;  %v275_v53 = vld [vmem:[#allocation5 + $0x158] sm:$0xff]  ;;  %v370_v54 = vld [vmem:[#allocation5 + $0x1e8] sm:$0xff]  ;;  %v274_v55 = vld [vmem:[#allocation5 + $0x150] sm:$0xff] }
  0x43   :  { %1572 = vmatpush3.msra.mxu0 %v114_v12  ;;  %1607 = vmatpush3.msra.mxu1 %v92_v13  ;;  %v369_v56 = vld [vmem:[#allocation5 + $0x1e0] sm:$0xff]  ;;  %v273_v57 = vld [vmem:[#allocation5 + $0x148] sm:$0xff]  ;;  %v368_v58 = vld [vmem:[#allocation5 + $0x1d8] sm:$0xff] }
  0x44   :  { %1573 = vmatprep.subr.mxu0 %v2167_v2  ;;  %1608 = vmatprep.subr.mxu1 %v2167_v2  ;;  %v272_v59 = vld [vmem:[#allocation5 + $0x140] sm:$0xff]  ;;  %v367_v60 = vld [vmem:[#allocation5 + $0x1d0] sm:$0xff]  ;;  %v271_v61 = vld [vmem:[#allocation5 + $0x138] sm:$0xff] }
  0x45   :  { %1574 = vmatpush3.msra.mxu0 %v113_v16  ;;  %1609 = vmatpush3.msra.mxu1 %v91_v17  ;;  %v366_v62 = vld [vmem:[#allocation5 + $0x1c8] sm:$0xff]  ;;  %v270_v63 = vld [vmem:[#allocation5 + $0x130] sm:$0xff]  ;;  %v365_v0 = vld [vmem:[#allocation5 + $0x1c0] sm:$0xff] }
  0x46   :  { %2046 = vset.pattern.permute.xlu1 %v2173_v19  ;;  %1575 = vmatprep.subr.mxu0 %v2167_v2  ;;  %v269_v1 = vld [vmem:[#allocation5 + $0x128] sm:$0xff]  ;;  %v268_v4 = vld [vmem:[#allocation5 + $0x120] sm:$0xff]  ;;  %v363_v5 = vld [vmem:[#allocation5 + $0x1b0] sm:$0xff] }
  0x47   :  { %631 = vperm.xlu1 %2046, %v71_v3   ;;  %1576 = vmatpush3.msra.mxu0 %v112_v18  ;;  %v267_v6 = vld [vmem:[#allocation5 + $0x118] sm:$0xff]  ;;  %v362_v7 = vld [vmem:[#allocation5 + $0x1a8] sm:$0xff]  ;;  %v266_v8 = vld [vmem:[#allocation5 + $0x110] sm:$0xff] }
  0x48   :  { %1577 = vmatprep.subr.mxu0 %v2167_v2  ;;  %1610 = vmatprep.subr.mxu1 %v2167_v2  ;;  %v361_v9 = vld [vmem:[#allocation5 + $0x1a0] sm:$0xff]  ;;  %v265_v10 = vld [vmem:[#allocation5 + $0x108] sm:$0xff]  ;;  %v360_v12 = vld [vmem:[#allocation5 + $0x198] sm:$0xff] }
  0x49   :  { %1578 = vmatpush3.msra.mxu0 %v111_v20  ;;  %1611 = vmatpush3.msra.mxu1 %v90_v21  ;;  %v264_v13 = vld [vmem:[#allocation5 + $0x100] sm:$0xff]  ;;  %v359_v14 = vld [vmem:[#allocation5 + $0x190] sm:$0xff]  ;;  %v465_v15 = vld [vmem:[#allocation5 + $0x278] sm:$0xff] }
  0x4a   :  { %1579 = vmatprep.subr.mxu0 %v2167_v2  ;;  %1612 = vmatprep.subr.mxu1 %v2167_v2  ;;  %v358_v16 = vld [vmem:[#allocation5 + $0x188] sm:$0xff]  ;;  %v464_v18 = vld [vmem:[#allocation5 + $0x270] sm:$0xff]  ;;  %v357_v19 = vld [vmem:[#allocation5 + $0x180] sm:$0xff] }
  0x4b   :  { %2047 = vset.pattern.permute.xlu1 %v2174_v25  ;;  %1580 = vmatpush3.msra.mxu0 %v110_v22  ;;  %v463_v20 = vld [vmem:[#allocation5 + $0x268] sm:$0xff]  ;;  %v558_v21 = vld [vmem:[#allocation5 + $0x2f8] sm:$0xff]  ;;  %v462_v22 = vld [vmem:[#allocation5 + $0x260] sm:$0xff] }
  0x4c   :  { %724 = vperm.xlu1 %2047, %v71_v3   ;;  %1581 = vmatprep.subr.mxu0 %v2167_v2  ;;  %v364_v3 = vld [vmem:[#allocation5 + $0x1b8] sm:$0xff]  ;;  %v452_v42 = vld [vmem:[#allocation5 + $0x210] sm:$0xff] }
  0x4d   :  { %1582 = vmatpush3.msra.mxu0 %v109_v23  ;;  %1613 = vmatpush3.msra.mxu1 %v89_v24  ;;  %v557_v23 = vld [vmem:[#allocation5 + $0x2f0] sm:$0xff]  ;;  %v461_v24 = vld [vmem:[#allocation5 + $0x258] sm:$0xff] }
  0x4e   :  { %1583 = vmatprep.subr.mxu0 %v2167_v2  ;;  %1614 = vmatprep.subr.mxu1 %v2167_v2 }
  0x4f   :  { %1584 = vmatpush3.msra.mxu0 %v108_v26  ;;  %1615 = vmatpush3.msra.mxu1 %v88_v27  ;;  %v460_v26 = vld [vmem:[#allocation5 + $0x250] sm:$0xff]  ;;  %v555_v27 = vld [vmem:[#allocation5 + $0x2e0] sm:$0xff] }
  0x50   :  { %1585 = vmatprep.subr.mxu0 %v2167_v2  ;;  %1616 = vmatprep.subr.mxu1 %v2167_v2 }
  0x51   :  { %1586 = vmatpush3.msra.mxu0 %v107_v28  ;;  %1617 = vmatpush3.msra.mxu1 %v87_v29  ;;  %v459_v28 = vld [vmem:[#allocation5 + $0x248] sm:$0xff]  ;;  %v554_v29 = vld [vmem:[#allocation5 + $0x2d8] sm:$0xff] }
  0x52   :  { %1587 = vmatprep.subr.mxu0 %v2167_v2  ;;  %1618 = vmatprep.subr.mxu1 %v2167_v2 }
  0x53   :  { %1588 = vmatpush3.msra.mxu0 %v106_v30  ;;  %1619 = vmatpush3.msra.mxu1 %v86_v31  ;;  %v458_v30 = vld [vmem:[#allocation5 + $0x240] sm:$0xff]  ;;  %v553_v31 = vld [vmem:[#allocation5 + $0x2d0] sm:$0xff] }
  0x54   :  { %1589 = vmatprep.subr.mxu0 %v2167_v2  ;;  %1620 = vmatprep.subr.mxu1 %v2167_v2 }
  0x55   :  { %1590 = vmatpush3.msra.mxu0 %v105_v32  ;;  %1621 = vmatpush3.msra.mxu1 %v85_v33  ;;  %v457_v32 = vld [vmem:[#allocation5 + $0x238] sm:$0xff]  ;;  %v552_v33 = vld [vmem:[#allocation5 + $0x2c8] sm:$0xff] }
  0x56   :  { %1591 = vmatprep.subr.mxu0 %v2167_v2  ;;  %1622 = vmatprep.subr.mxu1 %v2167_v2 }
  0x57   :  { %1592 = vmatpush3.msra.mxu0 %v104_v34  ;;  %1623 = vmatpush3.msra.mxu1 %v84_v35  ;;  %v456_v34 = vld [vmem:[#allocation5 + $0x230] sm:$0xff]  ;;  %v551_v35 = vld [vmem:[#allocation5 + $0x2c0] sm:$0xff] }
  0x58   :  { %1593 = vmatprep.subr.mxu0 %v2167_v2  ;;  %1624 = vmatprep.subr.mxu1 %v2167_v2 }
  0x59   :  { %1594 = vmatpush3.msra.mxu0 %v103_v36  ;;  %1625 = vmatpush3.msra.mxu1 %v83_v37  ;;  %v455_v36 = vld [vmem:[#allocation5 + $0x228] sm:$0xff]  ;;  %v550_v37 = vld [vmem:[#allocation5 + $0x2b8] sm:$0xff] }
  0x5a   :  { %1595 = vmatprep.subr.mxu0 %v2167_v2  ;;  %1626 = vmatprep.subr.mxu1 %v2167_v2 }
  0x5b   :  { %1596 = vmatpush3.msra.mxu0 %v102_v38  ;;  %1627 = vmatpush3.msra.mxu1 %v82_v39  ;;  %v454_v38 = vld [vmem:[#allocation5 + $0x220] sm:$0xff]  ;;  %v549_v39 = vld [vmem:[#allocation5 + $0x2b0] sm:$0xff] }
  0x5c   :  { %1635 = vmatprep.subr.mxu0 %v2167_v2  ;;  %1628 = vmatprep.subr.mxu1 %v2167_v2 }
  0x5d   :  { %1629 = vmatpush3.msra.mxu1 %v81_v40  ;;  %2048 = vset.pattern.permute.xlu0 %v2174_v25  ;;  %v556_v25 = vld [vmem:[#allocation5 + $0x2e8] sm:$0xff]  ;;  %v453_v40 = vld [vmem:[#allocation5 + $0x218] sm:$0xff] }
  0x5e   :  { %1630 = vmatprep.subr.mxu1 %v2167_v2 }
  0x5f   :  { %1631 = vmatpush3.msra.mxu1 %v80_v41  ;;  %v548_v41 = vld [vmem:[#allocation5 + $0x2a8] sm:$0xff] }
  0x60   :  { %1670 = vmatprep.subr.mxu1 %v2167_v2 }
  0xb3   :  { %v98_v44 = vpop.permute.xlu0 %97  ;;  %v260_v11 = vpop.permute.xlu1 %259 }
  0xb4   :  { %vm99_vm1 = vcmp.eq.s32.totalorder %v2252_v43, %v98_v44  ;;  %vm261_vm3 = vcmp.eq.s32.totalorder %v2252_v43, %v260_v11  ;;  %v547_v44 = vld [vmem:[#allocation5 + $0x2a0] sm:$0xff] }
  0xb5   :  { %1598 = vmatmul.mubr.msk.f32.vlgmr.msra.gmra.mxu0 %vm99_vm1, %v2175_v46  ;;  %v640_v11 = vld [vmem:[#allocation5 + $0x320] sm:$0xff] }
  0xb6   :  { %1636 = vmatpush3.msra.mxu0 %v279_v45  ;;  %1667 = vmatprep.mubr.msk.f32.mxu0 %vm2168_vm0, %v2167_v2  ;;  %v451_v45 = vld [vmem:[#allocation5 + $0x208] sm:$0xff] }
  0xb7   :  { %1637 = vmatprep.subr.mxu0 %v2167_v2 }
  0xb8   :  { %1638 = vmatpush3.msra.mxu0 %v278_v47  ;;  %v76_v49 = vpop.permute.xlu0 %75  ;;  %v353_v17 = vpop.permute.xlu1 %352 }
  0xb9   :  { %1639 = vmatprep.subr.mxu0 %v2167_v2  ;;  %vm77_vm2 = vcmp.eq.s32.totalorder %v2252_v43, %v76_v49  ;;  %vm354_vm4 = vcmp.eq.s32.totalorder %v2252_v43, %v353_v17  ;;  %v450_v49 = vld [vmem:[#allocation5 + $0x200] sm:$0xff]  ;;  %v637_v17 = vld [vmem:[#allocation5 + $0x308] sm:$0xff] }
  0xba   :  { %1640 = vmatpush3.msra.mxu0 %v277_v48  ;;  %1633 = vmatmul.mubr.msk.f32.vlgmr.msra.gmra.mxu1 %vm77_vm2, %v2175_v46  ;;  %v546_v48 = vld [vmem:[#allocation5 + $0x298] sm:$0xff] }
  0xbb   :  { %1641 = vmatprep.subr.mxu0 %v2167_v2  ;;  %1671 = vmatpush3.msra.mxu1 %v372_v50  ;;  %v545_v50 = vld [vmem:[#allocation5 + $0x290] sm:$0xff] }
  0xbc   :  { %1642 = vmatpush3.msra.mxu0 %v276_v51  ;;  %1672 = vmatprep.subr.mxu1 %v2167_v2  ;;  %v651_v51 = vld [vmem:[#allocation5 + $0x378] sm:$0xff] }
  0xbd   :  { %1643 = vmatprep.subr.mxu0 %v2167_v2  ;;  %1673 = vmatpush3.msra.mxu1 %v371_v52  ;;  %v446_v47 = vpop.permute.xlu1 %445  ;;  %v544_v52 = vld [vmem:[#allocation5 + $0x288] sm:$0xff] }
  0xbe   :  { %1644 = vmatpush3.msra.mxu0 %v275_v53  ;;  %1674 = vmatprep.subr.mxu1 %v2167_v2  ;;  %vm447_vm5 = vcmp.eq.s32.totalorder %v2252_v43, %v446_v47  ;;  %v539_v53 = vpop.permute.xlu0 %538  ;;  %v930_v47 = vld [vmem:[#allocation7 + $0xc8] sm:$0xff] }
  0xbf   :  { %1645 = vmatprep.subr.mxu0 %v2167_v2  ;;  %1675 = vmatpush3.msra.mxu1 %v370_v54  ;;  %v650_v54 = vld [vmem:[#allocation5 + $0x370] sm:$0xff]  ;;  %vm540_vm6 = vcmp.eq.s32.totalorder %v2252_v43, %v539_v53  ;;  %v926_v53 = vld [vmem:[#allocation7 + $0xa8] sm:$0xff] }
  0xc0   :  { %1646 = vmatpush3.msra.mxu0 %v274_v55  ;;  %1676 = vmatprep.subr.mxu1 %v2167_v2  ;;  %v543_v55 = vld [vmem:[#allocation5 + $0x280] sm:$0xff] }
  0xc1   :  { %1647 = vmatprep.subr.mxu0 %v2167_v2  ;;  %1677 = vmatpush3.msra.mxu1 %v369_v56  ;;  %v649_v56 = vld [vmem:[#allocation5 + $0x368] sm:$0xff] }
  0xc2   :  { %1648 = vmatpush3.msra.mxu0 %v273_v57  ;;  %1678 = vmatprep.subr.mxu1 %v2167_v2  ;;  %v744_v57 = vld [vmem:[#allocation5 + $0x3f8] sm:$0xff] }
  0xc3   :  { %1649 = vmatprep.subr.mxu0 %v2167_v2  ;;  %1679 = vmatpush3.msra.mxu1 %v368_v58  ;;  %v648_v58 = vld [vmem:[#allocation5 + $0x360] sm:$0xff] }
  0xc4   :  { %1650 = vmatpush3.msra.mxu0 %v272_v59  ;;  %1680 = vmatprep.subr.mxu1 %v2167_v2  ;;  %v743_v59 = vld [vmem:[#allocation5 + $0x3f0] sm:$0xff] }
  0xc5   :  { %1651 = vmatprep.subr.mxu0 %v2167_v2  ;;  %1681 = vmatpush3.msra.mxu1 %v367_v60  ;;  %v647_v60 = vld [vmem:[#allocation5 + $0x358] sm:$0xff] }
  0xc6   :  { %1652 = vmatpush3.msra.mxu0 %v271_v61  ;;  %1682 = vmatprep.subr.mxu1 %v2167_v2  ;;  %v742_v61 = vld [vmem:[#allocation5 + $0x3e8] sm:$0xff] }
  0xc7   :  { %1653 = vmatprep.subr.mxu0 %v2167_v2  ;;  %1683 = vmatpush3.msra.mxu1 %v366_v62  ;;  %v646_v62 = vld [vmem:[#allocation5 + $0x350] sm:$0xff] }
  0xc8   :  { %1654 = vmatpush3.msra.mxu0 %v270_v63  ;;  %1684 = vmatprep.subr.mxu1 %v2167_v2  ;;  %v741_v63 = vld [vmem:[#allocation5 + $0x3e0] sm:$0xff] }
  0xc9   :  { %1655 = vmatprep.subr.mxu0 %v2167_v2  ;;  %1685 = vmatpush3.msra.mxu1 %v365_v0  ;;  %v645_v0 = vld [vmem:[#allocation5 + $0x348] sm:$0xff] }
  0xca   :  { %1656 = vmatpush3.msra.mxu0 %v269_v1  ;;  %1686 = vmatprep.subr.mxu1 %v2167_v2  ;;  %v740_v1 = vld [vmem:[#allocation5 + $0x3d8] sm:$0xff] }
  0xcb   :  { %1657 = vmatprep.subr.mxu0 %v2167_v2  ;;  %1687 = vmatpush3.msra.mxu1 %v364_v3  ;;  %v644_v3 = vld [vmem:[#allocation5 + $0x340] sm:$0xff] }
  0xcc   :  { %1658 = vmatpush3.msra.mxu0 %v268_v4  ;;  %1688 = vmatprep.subr.mxu1 %v2167_v2  ;;  %v739_v4 = vld [vmem:[#allocation5 + $0x3d0] sm:$0xff] }
  0xcd   :  { %1659 = vmatprep.subr.mxu0 %v2167_v2  ;;  %1689 = vmatpush3.msra.mxu1 %v363_v5  ;;  %v643_v5 = vld [vmem:[#allocation5 + $0x338] sm:$0xff] }
  0xce   :  { %1660 = vmatpush3.msra.mxu0 %v267_v6  ;;  %1690 = vmatprep.subr.mxu1 %v2167_v2  ;;  %v738_v6 = vld [vmem:[#allocation5 + $0x3c8] sm:$0xff] }
  0xcf   :  { %1661 = vmatprep.subr.mxu0 %v2167_v2  ;;  %1691 = vmatpush3.msra.mxu1 %v362_v7  ;;  %v642_v7 = vld [vmem:[#allocation5 + $0x330] sm:$0xff] }
  0xd0   :  { %1662 = vmatpush3.msra.mxu0 %v266_v8  ;;  %1692 = vmatprep.subr.mxu1 %v2167_v2  ;;  %v737_v8 = vld [vmem:[#allocation5 + $0x3c0] sm:$0xff] }
  0xd1   :  { %1663 = vmatprep.subr.mxu0 %v2167_v2  ;;  %1693 = vmatpush3.msra.mxu1 %v361_v9  ;;  %v641_v9 = vld [vmem:[#allocation5 + $0x328] sm:$0xff] }
  0xd2   :  { %1664 = vmatpush3.msra.mxu0 %v265_v10  ;;  %1694 = vmatprep.subr.mxu1 %v2167_v2  ;;  %v736_v10 = vld [vmem:[#allocation5 + $0x3b8] sm:$0xff] }
  0xd3   :  { %1665 = vmatprep.subr.mxu0 %v2167_v2  ;;  %1695 = vmatpush3.msra.mxu1 %v360_v12  ;;  %v735_v12 = vld [vmem:[#allocation5 + $0x3b0] sm:$0xff] }
  0xd4   :  { %1666 = vmatpush3.msra.mxu0 %v264_v13  ;;  %1696 = vmatprep.subr.mxu1 %v2167_v2  ;;  %v639_v13 = vld [vmem:[#allocation5 + $0x318] sm:$0xff] }
  0xd5   :  { %1668 = vmatmul.mubr.msk.f32.vlgmr.msra.gmra.mxu0 %vm261_vm3, %v2175_v46  ;;  %1697 = vmatpush3.msra.mxu1 %v359_v14  ;;  %v734_v14 = vld [vmem:[#allocation5 + $0x3a8] sm:$0xff] }
  0xd6   :  { %1705 = vmatprep.subr.mxu0 %v2167_v2  ;;  %1698 = vmatprep.subr.mxu1 %v2167_v2 }
  0xd7   :  { %1706 = vmatpush3.msra.mxu0 %v465_v15  ;;  %1699 = vmatpush3.msra.mxu1 %v358_v16  ;;  %v638_v15 = vld [vmem:[#allocation5 + $0x310] sm:$0xff]  ;;  %v733_v16 = vld [vmem:[#allocation5 + $0x3a0] sm:$0xff] }
  0xd8   :  { %1707 = vmatprep.subr.mxu0 %v2167_v2  ;;  %1700 = vmatprep.subr.mxu1 %v2167_v2 }
  0xd9   :  { %1708 = vmatpush3.msra.mxu0 %v464_v18  ;;  %1701 = vmatpush3.msra.mxu1 %v357_v19  ;;  %v632_v18 = vpop.permute.xlu1 %631  ;;  %v732_v19 = vld [vmem:[#allocation5 + $0x398] sm:$0xff] }
  0xda   :  { %1702 = vmatprep.mubr.msk.f32.mxu1 %vm2168_vm0, %v2167_v2  ;;  %1709 = vmatprep.subr.mxu0 %v2167_v2  ;;  %vm633_vm7 = vcmp.eq.s32.totalorder %v2252_v43, %v632_v18  ;;  %v922_v18 = vld [vmem:[#allocation7 + $0x88] sm:$0xff] }
  0xdb   :  { %1703 = vmatmul.mubr.msk.f32.vlgmr.msra.gmra.mxu1 %vm354_vm4, %v2175_v46  ;;  %1710 = vmatpush3.msra.mxu0 %v463_v20  ;;  %v636_v20 = vld [vmem:[#allocation5 + $0x300] sm:$0xff] }
  0xdc   :  { %1740 = vmatprep.subr.mxu1 %v2167_v2  ;;  %1711 = vmatprep.subr.mxu0 %v2167_v2 }
  0xdd   :  { %1741 = vmatpush3.msra.mxu1 %v558_v21  ;;  %1712 = vmatpush3.msra.mxu0 %v462_v22  ;;  %v731_v21 = vld [vmem:[#allocation5 + $0x390] sm:$0xff]  ;;  %v730_v22 = vld [vmem:[#allocation5 + $0x388] sm:$0xff] }
  0xde   :  { %1742 = vmatprep.subr.mxu1 %v2167_v2  ;;  %1713 = vmatprep.subr.mxu0 %v2167_v2 }
  0xdf   :  { %1743 = vmatpush3.msra.mxu1 %v557_v23  ;;  %1714 = vmatpush3.msra.mxu0 %v461_v24  ;;  %v725_v23 = vpop.permute.xlu1 %724  ;;  %v729_v24 = vld [vmem:[#allocation5 + $0x380] sm:$0xff] }
  0xe0   :  { %1744 = vmatprep.subr.mxu1 %v2167_v2  ;;  %1715 = vmatprep.subr.mxu0 %v2167_v2  ;;  %vm726_vm8 = vcmp.eq.s32.totalorder %v2252_v43, %v725_v23  ;;  %v838_v43 = vld [vmem:[#allocation7 + $0x68] sm:$0xff]  ;;  %v1029_v23 = vld [vmem:[#allocation7 + $0x160] sm:$0xff] }
  0xe1   :  { %1745 = vmatpush3.msra.mxu1 %v556_v25  ;;  %1716 = vmatpush3.msra.mxu0 %v460_v26  ;;  %v840_v25 = vld [vmem:[#allocation7 + $0x78] sm:$0xff]  ;;  %v839_v26 = vld [vmem:[#allocation7 + $0x70] sm:$0xff] }
  0xe2   :  { %1746 = vmatprep.subr.mxu1 %v2167_v2  ;;  %1717 = vmatprep.subr.mxu0 %v2167_v2 }
  0xe3   :  { %1747 = vmatpush3.msra.mxu1 %v555_v27  ;;  %1718 = vmatpush3.msra.mxu0 %v459_v28  ;;  %v837_v27 = vld [vmem:[#allocation7 + $0x60] sm:$0xff]  ;;  %v836_v28 = vld [vmem:[#allocation7 + $0x58] sm:$0xff] }
  0xe4   :  { %1748 = vmatprep.subr.mxu1 %v2167_v2  ;;  %1719 = vmatprep.subr.mxu0 %v2167_v2 }
  0xe5   :  { %1749 = vmatpush3.msra.mxu1 %v554_v29  ;;  %1720 = vmatpush3.msra.mxu0 %v458_v30  ;;  %v834_v29 = vld [vmem:[#allocation7 + $0x48] sm:$0xff]  ;;  %v833_v30 = vld [vmem:[#allocation7 + $0x40] sm:$0xff] }
  0xe6   :  { %1750 = vmatprep.subr.mxu1 %v2167_v2  ;;  %1721 = vmatprep.subr.mxu0 %v2167_v2 }
  0xe7   :  { %1751 = vmatpush3.msra.mxu1 %v553_v31  ;;  %1722 = vmatpush3.msra.mxu0 %v457_v32  ;;  %v832_v31 = vld [vmem:[#allocation7 + $0x38] sm:$0xff]  ;;  %v831_v32 = vld [vmem:[#allocation7 + $0x30] sm:$0xff] }
  0xe8   :  { %1752 = vmatprep.subr.mxu1 %v2167_v2  ;;  %1723 = vmatprep.subr.mxu0 %v2167_v2 }
  0xe9   :  { %1753 = vmatpush3.msra.mxu1 %v552_v33  ;;  %1724 = vmatpush3.msra.mxu0 %v456_v34  ;;  %v830_v33 = vld [vmem:[#allocation7 + $0x28] sm:$0xff]  ;;  %v829_v34 = vld [vmem:[#allocation7 + $0x20] sm:$0xff] }
  0xea   :  { %1754 = vmatprep.subr.mxu1 %v2167_v2  ;;  %1725 = vmatprep.subr.mxu0 %v2167_v2 }
  0xeb   :  { %1755 = vmatpush3.msra.mxu1 %v551_v35  ;;  %1726 = vmatpush3.msra.mxu0 %v455_v36  ;;  %v828_v35 = vld [vmem:[#allocation7 + $0x18] sm:$0xff]  ;;  %v827_v36 = vld [vmem:[#allocation7 + $0x10] sm:$0xff] }
  0xec   :  { %1756 = vmatprep.subr.mxu1 %v2167_v2  ;;  %1727 = vmatprep.subr.mxu0 %v2167_v2 }
  0xed   :  { %1757 = vmatpush3.msra.mxu1 %v550_v37  ;;  %1728 = vmatpush3.msra.mxu0 %v454_v38  ;;  %v826_v37 = vld [vmem:[#allocation7 + $0x8] sm:$0xff]  ;;  %v825_v38 = vld [vmem:[#allocation7] sm:$0xff] }
  0xee   :  { %1758 = vmatprep.subr.mxu1 %v2167_v2  ;;  %1729 = vmatprep.subr.mxu0 %v2167_v2 }
  0xef   :  { %1759 = vmatpush3.msra.mxu1 %v549_v39  ;;  %1730 = vmatpush3.msra.mxu0 %v453_v40  ;;  %v936_v39 = vld [vmem:[#allocation7 + $0xf8] sm:$0xff]  ;;  %v935_v40 = vld [vmem:[#allocation7 + $0xf0] sm:$0xff] }
  0xf0   :  { %1760 = vmatprep.subr.mxu1 %v2167_v2  ;;  %1731 = vmatprep.subr.mxu0 %v2167_v2 }
  0xf1   :  { %1761 = vmatpush3.msra.mxu1 %v548_v41  ;;  %1732 = vmatpush3.msra.mxu0 %v452_v42  ;;  %v934_v41 = vld [vmem:[#allocation7 + $0xe8] sm:$0xff]  ;;  %v933_v42 = vld [vmem:[#allocation7 + $0xe0] sm:$0xff] }
  0xf2   :  { %1762 = vmatprep.subr.mxu1 %v2167_v2  ;;  %1733 = vmatprep.subr.mxu0 %v2167_v2 }
  0xf3   :  { %1763 = vmatpush3.msra.mxu1 %v547_v44  ;;  %1734 = vmatpush3.msra.mxu0 %v451_v45  ;;  %v932_v44 = vld [vmem:[#allocation7 + $0xd8] sm:$0xff]  ;;  %v931_v45 = vld [vmem:[#allocation7 + $0xd0] sm:$0xff] }
  0xf4   :  { %1764 = vmatprep.subr.mxu1 %v2167_v2  ;;  %1735 = vmatprep.subr.mxu0 %v2167_v2 }
  0xf5   :  { %1765 = vmatpush3.msra.mxu1 %v546_v48  ;;  %1736 = vmatpush3.msra.mxu0 %v450_v49  ;;  %v929_v48 = vld [vmem:[#allocation7 + $0xc0] sm:$0xff]  ;;  %v928_v49 = vld [vmem:[#allocation7 + $0xb8] sm:$0xff] }
  0xf6   :  { %1737 = vmatprep.mubr.msk.f32.mxu0 %vm2168_vm0, %v2167_v2  ;;  %1766 = vmatprep.subr.mxu1 %v2167_v2 }
  0xf7   :  { %1738 = vmatmul.mubr.msk.f32.vlgmr.msra.gmra.mxu0 %vm447_vm5, %v2175_v46  ;;  %1767 = vmatpush3.msra.mxu1 %v545_v50 }
  0xf8   :  { %1775 = vmatprep.subr.mxu0 %v2167_v2  ;;  %1768 = vmatprep.subr.mxu1 %v2167_v2 }
  0xf9   :  { %1776 = vmatpush3.msra.mxu0 %v651_v51  ;;  %1769 = vmatpush3.msra.mxu1 %v544_v52  ;;  %v927_v51 = vld [vmem:[#allocation7 + $0xb0] sm:$0xff] }
  0xfa   :  { %1777 = vmatprep.subr.mxu0 %v2167_v2  ;;  %1770 = vmatprep.subr.mxu1 %v2167_v2 }
  0xfb   :  { %1778 = vmatpush3.msra.mxu0 %v650_v54  ;;  %1771 = vmatpush3.msra.mxu1 %v543_v55  ;;  %v925_v54 = vld [vmem:[#allocation7 + $0xa0] sm:$0xff] }
  0xfc   :  { %1772 = vmatprep.mubr.msk.f32.mxu1 %vm2168_vm0, %v2167_v2  ;;  %1779 = vmatprep.subr.mxu0 %v2167_v2 }
  0xfd   :  { %1773 = vmatmul.mubr.msk.f32.vlgmr.msra.gmra.mxu1 %vm540_vm6, %v2175_v46  ;;  %1780 = vmatpush3.msra.mxu0 %v649_v56 }
  0xfe   :  { %1810 = vmatprep.subr.mxu1 %v2167_v2  ;;  %1781 = vmatprep.subr.mxu0 %v2167_v2 }
  0xff   :  { %1811 = vmatpush3.msra.mxu1 %v744_v57  ;;  %1782 = vmatpush3.msra.mxu0 %v648_v58  ;;  %v924_v57 = vld [vmem:[#allocation7 + $0x98] sm:$0xff] }
 0x100   :  { %1812 = vmatprep.subr.mxu1 %v2167_v2  ;;  %1783 = vmatprep.subr.mxu0 %v2167_v2 }
 0x101   :  { %1813 = vmatpush3.msra.mxu1 %v743_v59  ;;  %1784 = vmatpush3.msra.mxu0 %v647_v60 }
 0x102   :  { %1814 = vmatprep.subr.mxu1 %v2167_v2  ;;  %1785 = vmatprep.subr.mxu0 %v2167_v2 }
 0x103   :  { %1815 = vmatpush3.msra.mxu1 %v742_v61  ;;  %1786 = vmatpush3.msra.mxu0 %v646_v62 }
 0x104   :  { %1816 = vmatprep.subr.mxu1 %v2167_v2  ;;  %1787 = vmatprep.subr.mxu0 %v2167_v2 }
 0x105   :  { %1817 = vmatpush3.msra.mxu1 %v741_v63  ;;  %1788 = vmatpush3.msra.mxu0 %v645_v0 }
 0x106   :  { %1818 = vmatprep.subr.mxu1 %v2167_v2  ;;  %1789 = vmatprep.subr.mxu0 %v2167_v2 }
 0x107   :  { %1819 = vmatpush3.msra.mxu1 %v740_v1  ;;  %1790 = vmatpush3.msra.mxu0 %v644_v3 }
 0x108   :  { %1820 = vmatprep.subr.mxu1 %v2167_v2  ;;  %1791 = vmatprep.subr.mxu0 %v2167_v2 }
 0x109   :  { %1821 = vmatpush3.msra.mxu1 %v739_v4  ;;  %1792 = vmatpush3.msra.mxu0 %v643_v5 }
 0x10a   :  { %1822 = vmatprep.subr.mxu1 %v2167_v2  ;;  %1793 = vmatprep.subr.mxu0 %v2167_v2 }
 0x10b   :  { %1823 = vmatpush3.msra.mxu1 %v738_v6  ;;  %1794 = vmatpush3.msra.mxu0 %v642_v7 }
 0x10c   :  { %1824 = vmatprep.subr.mxu1 %v2167_v2  ;;  %1795 = vmatprep.subr.mxu0 %v2167_v2 }
 0x10d   :  { %1825 = vmatpush3.msra.mxu1 %v737_v8  ;;  %1796 = vmatpush3.msra.mxu0 %v641_v9 }
 0x10e   :  { %1826 = vmatprep.subr.mxu1 %v2167_v2  ;;  %1797 = vmatprep.subr.mxu0 %v2167_v2 }
 0x10f   :  { %1827 = vmatpush3.msra.mxu1 %v736_v10  ;;  %1798 = vmatpush3.msra.mxu0 %v640_v11 }
 0x110   :  { %1828 = vmatprep.subr.mxu1 %v2167_v2  ;;  %1799 = vmatprep.subr.mxu0 %v2167_v2 }
 0x111   :  { %1829 = vmatpush3.msra.mxu1 %v735_v12  ;;  %1800 = vmatpush3.msra.mxu0 %v639_v13  ;;  %v1338_v12 = vld [vmem:[#allocation8] ss:$0 sm:$0xff] }
 0x112   :  { %1830 = vmatprep.subr.mxu1 %v2167_v2  ;;  %1801 = vmatprep.subr.mxu0 %v2167_v2 }
 0x113   :  { %1831 = vmatpush3.msra.mxu1 %v734_v14  ;;  %1802 = vmatpush3.msra.mxu0 %v638_v15 }
 0x114   :  { %1832 = vmatprep.subr.mxu1 %v2167_v2  ;;  %1803 = vmatprep.subr.mxu0 %v2167_v2 }
 0x115   :  { %1833 = vmatpush3.msra.mxu1 %v733_v16  ;;  %1804 = vmatpush3.msra.mxu0 %v637_v17  ;;  %v923_v17 = vld [vmem:[#allocation7 + $0x90] sm:$0xff] }
 0x116   :  { %1834 = vmatprep.subr.mxu1 %v2167_v2  ;;  %1805 = vmatprep.subr.mxu0 %v2167_v2 }
 0x117   :  { %1835 = vmatpush3.msra.mxu1 %v732_v19  ;;  %1806 = vmatpush3.msra.mxu0 %v636_v20  ;;  %v921_v19 = vld [vmem:[#allocation7 + $0x80] sm:$0xff]  ;;  %v1032_v20 = vld [vmem:[#allocation7 + $0x178] sm:$0xff] }
 0x118   :  { %1807 = vmatprep.mubr.msk.f32.mxu0 %vm2168_vm0, %v2167_v2  ;;  %1836 = vmatprep.subr.mxu1 %v2167_v2 }
 0x119   :  { %1808 = vmatmul.mubr.msk.f32.vlgmr.msra.gmra.mxu0 %vm633_vm7, %v2175_v46  ;;  %1837 = vmatpush3.msra.mxu1 %v731_v21  ;;  %v1031_v21 = vld [vmem:[#allocation7 + $0x170] sm:$0xff] }
 0x11a   :  { %1838 = vmatprep.subr.mxu1 %v2167_v2  ;;  %1842 = vmatprep.mubr.msk.f32.mxu1 %vm2168_vm0, %v2167_v2 }
 0x11b   :  { %1839 = vmatpush3.msra.mxu1 %v730_v22  ;;  %1845 = vmatprep.subr.mxu0 %v2167_v2  ;;  %v1030_v22 = vld [vmem:[#allocation7 + $0x168] sm:$0xff] }
 0x11c   :  { %1840 = vmatprep.subr.mxu1 %v2167_v2  ;;  %1877 = vmatprep.mubr.msk.f32.mxu0 %vm2168_vm0, %v2167_v2 }
 0x11d   :  { %1841 = vmatpush3.msra.mxu1 %v729_v24  ;;  %1846 = vmatpush3.msra.mxu0 %v840_v25  ;;  %v1028_v24 = vld [vmem:[#allocation7 + $0x158] sm:$0xff]  ;;  %v1027_v25 = vld [vmem:[#allocation7 + $0x150] sm:$0xff] }
 0x11e   :  { %1843 = vmatmul.mubr.msk.f32.vlgmr.msra.gmra.mxu1 %vm726_vm8, %v2175_v46  ;;  %1880 = vmatprep.subr.mxu1 %v2167_v2  ;;  %v835_v46 = vld [vmem:[#allocation7 + $0x50] sm:$0xff] }
 0x11f   :  { %1912 = vmatprep.mubr.msk.f32.mxu1 %vm2168_vm0, %v2167_v2  ;;  %1847 = vmatprep.subr.mxu0 %v2167_v2 }
 0x120   :  { %1848 = vmatpush3.msra.mxu0 %v839_v26  ;;  %1881 = vmatpush3.msra.mxu1 %v936_v39  ;;  %v1026_v26 = vld [vmem:[#allocation7 + $0x148] sm:$0xff]  ;;  %v1128_v39 = vld [vmem:[#allocation7 + $0x1f8] sm:$0xff] }
 0x121   :  { %1849 = vmatprep.subr.mxu0 %v2167_v2  ;;  %1882 = vmatprep.subr.mxu1 %v2167_v2 }
 0x122   :  { %1850 = vmatpush3.msra.mxu0 %v838_v43  ;;  %1883 = vmatpush3.msra.mxu1 %v935_v40  ;;  %v1025_v43 = vld [vmem:[#allocation7 + $0x140] sm:$0xff]  ;;  %v1127_v40 = vld [vmem:[#allocation7 + $0x1f0] sm:$0xff] }
 0x123   :  { %1851 = vmatprep.subr.mxu0 %v2167_v2  ;;  %1884 = vmatprep.subr.mxu1 %v2167_v2 }
 0x124   :  { %1852 = vmatpush3.msra.mxu0 %v837_v27  ;;  %1885 = vmatpush3.msra.mxu1 %v934_v41  ;;  %v1024_v27 = vld [vmem:[#allocation7 + $0x138] sm:$0xff]  ;;  %v1126_v41 = vld [vmem:[#allocation7 + $0x1e8] sm:$0xff] }
 0x125   :  { %1853 = vmatprep.subr.mxu0 %v2167_v2  ;;  %1886 = vmatprep.subr.mxu1 %v2167_v2 }
 0x126   :  { %1854 = vmatpush3.msra.mxu0 %v836_v28  ;;  %1887 = vmatpush3.msra.mxu1 %v933_v42  ;;  %v1023_v28 = vld [vmem:[#allocation7 + $0x130] sm:$0xff]  ;;  %v1125_v42 = vld [vmem:[#allocation7 + $0x1e0] sm:$0xff] }
 0x127   :  { %1855 = vmatprep.subr.mxu0 %v2167_v2  ;;  %1888 = vmatprep.subr.mxu1 %v2167_v2 }
 0x128   :  { %1856 = vmatpush3.msra.mxu0 %v835_v46  ;;  %1889 = vmatpush3.msra.mxu1 %v932_v44  ;;  %v1022_v46 = vld [vmem:[#allocation7 + $0x128] sm:$0xff]  ;;  %v1124_v44 = vld [vmem:[#allocation7 + $0x1d8] sm:$0xff] }
 0x129   :  { %1857 = vmatprep.subr.mxu0 %v2167_v2  ;;  %1890 = vmatprep.subr.mxu1 %v2167_v2 }
 0x12a   :  { %1858 = vmatpush3.msra.mxu0 %v834_v29  ;;  %1891 = vmatpush3.msra.mxu1 %v931_v45  ;;  %v1021_v29 = vld [vmem:[#allocation7 + $0x120] sm:$0xff]  ;;  %v1123_v45 = vld [vmem:[#allocation7 + $0x1d0] sm:$0xff] }
 0x12b   :  { %1859 = vmatprep.subr.mxu0 %v2167_v2  ;;  %1892 = vmatprep.subr.mxu1 %v2167_v2 }
 0x12c   :  { %1860 = vmatpush3.msra.mxu0 %v833_v30  ;;  %1893 = vmatpush3.msra.mxu1 %v930_v47  ;;  %v1020_v30 = vld [vmem:[#allocation7 + $0x118] sm:$0xff]  ;;  %v1122_v47 = vld [vmem:[#allocation7 + $0x1c8] sm:$0xff] }
 0x12d   :  { %1861 = vmatprep.subr.mxu0 %v2167_v2  ;;  %1894 = vmatprep.subr.mxu1 %v2167_v2 }
 0x12e   :  { %1862 = vmatpush3.msra.mxu0 %v832_v31  ;;  %1895 = vmatpush3.msra.mxu1 %v929_v48  ;;  %v1339_v31 = vld [vmem:[#allocation8 + $0x1] ss:$0 sm:$0xff] }
 0x12f   :  { %1863 = vmatprep.subr.mxu0 %v2167_v2  ;;  %1896 = vmatprep.subr.mxu1 %v2167_v2  ;;  %v1121_v48 = vld [vmem:[#allocation7 + $0x1c0] sm:$0xff] }
 0x130   :  { %1864 = vmatpush3.msra.mxu0 %v831_v32  ;;  %1897 = vmatpush3.msra.mxu1 %v928_v49  ;;  %v1120_v49 = vld [vmem:[#allocation7 + $0x1b8] sm:$0xff] }
 0x131   :  { %1865 = vmatprep.subr.mxu0 %v2167_v2  ;;  %1898 = vmatprep.subr.mxu1 %v2167_v2 }
 0x132   :  { %1866 = vmatpush3.msra.mxu0 %v830_v33  ;;  %1899 = vmatpush3.msra.mxu1 %v927_v51  ;;  %v1118_v51 = vld [vmem:[#allocation7 + $0x1a8] sm:$0xff] }
 0x133   :  { %1867 = vmatprep.subr.mxu0 %v2167_v2  ;;  %1900 = vmatprep.subr.mxu1 %v2167_v2 }
 0x134   :  { %1868 = vmatpush3.msra.mxu0 %v829_v34  ;;  %1901 = vmatpush3.msra.mxu1 %v926_v53  ;;  %v1116_v53 = vld [vmem:[#allocation7 + $0x198] sm:$0xff] }
 0x135   :  { %1869 = vmatprep.subr.mxu0 %v2167_v2  ;;  %1902 = vmatprep.subr.mxu1 %v2167_v2 }
 0x136   :  { %1870 = vmatpush3.msra.mxu0 %v828_v35  ;;  %1903 = vmatpush3.msra.mxu1 %v925_v54  ;;  %v1340_v54 = vld [vmem:[#allocation8 + $0x2] ss:$0 sm:$0xff] }
 0x137   :  { %1871 = vmatprep.subr.mxu0 %v2167_v2  ;;  %1904 = vmatprep.subr.mxu1 %v2167_v2 }
 0x138   :  { %1872 = vmatpush3.msra.mxu0 %v827_v36  ;;  %1905 = vmatpush3.msra.mxu1 %v924_v57  ;;  %v1019_v36 = vld [vmem:[#allocation7 + $0x110] sm:$0xff] }
 0x139   :  { %1873 = vmatprep.subr.mxu0 %v2167_v2  ;;  %1906 = vmatprep.subr.mxu1 %v2167_v2 }
 0x13a   :  { %1874 = vmatpush3.msra.mxu0 %v826_v37  ;;  %1907 = vmatpush3.msra.mxu1 %v923_v17  ;;  %v1018_v37 = vld [vmem:[#allocation7 + $0x108] sm:$0xff]  ;;  %v1212_v17 = vld [vmem:[#allocation7 + $0x210] sm:$0xff] }
 0x13b   :  { %1875 = vmatprep.subr.mxu0 %v2167_v2  ;;  %1908 = vmatprep.subr.mxu1 %v2167_v2 }
 0x13c   :  { %1876 = vmatpush3.msra.mxu0 %v825_v38  ;;  %1909 = vmatpush3.msra.mxu1 %v922_v18  ;;  %v1017_v38 = vld [vmem:[#allocation7 + $0x100] sm:$0xff]  ;;  %v1211_v18 = vld [vmem:[#allocation7 + $0x208] sm:$0xff] }
 0x13d   :  { %1915 = vmatprep.subr.mxu0 %v2167_v2  ;;  %1910 = vmatprep.subr.mxu1 %v2167_v2 }
 0x13e   :  { %1911 = vmatpush3.msra.mxu1 %v921_v19  ;;  %v1210_v19 = vld [vmem:[#allocation7 + $0x200] sm:$0xff] }
 0x13f   :  { %1950 = vmatprep.subr.mxu1 %v2167_v2 }
 0x175   :  { %v184_v50 = vpop.f32.mrf.mxu0 }
 0x177   :  { %v1599_v52 = vpop.f32.mrf.mxu0 }
 0x178   :  { %v1117_v52 = vld [vmem:[#allocation7 + $0x1a0] sm:$0xff] }
 0x17a   :  { %v254_v55 = vpop.f32.mrf.mxu1 }
 0x17b   :  { %v255_v56 = vadd.f32 %v254_v55, %v184_v50  ;;  %v1119_v50 = vld [vmem:[#allocation7 + $0x1b0] sm:$0xff] }
 0x17c   :  { %v1634_v58 = vpop.f32.mrf.mxu1 }
 0x195   :  { %v346_v59 = vpop.f32.mrf.mxu0 }
 0x196   :  { %v350_v4 = vadd.f32 %v346_v59, %v255_v56  ;;  %v1115_v59 = vld [vmem:[#allocation7 + $0x190] sm:$0xff] }
 0x197   :  { %v1669_v60 = vpop.f32.mrf.mxu0 }
 0x198   :  { %v1114_v60 = vld [vmem:[#allocation7 + $0x188] sm:$0xff] }
 0x19b   :  { %v439_v61 = vpop.f32.mrf.mxu1 }
 0x19c   :  { %v443_v5 = vadd.f32 %v439_v61, %v350_v4  ;;  %v1113_v61 = vld [vmem:[#allocation7 + $0x180] sm:$0xff]  ;;  %v1220_v4 = vld [vmem:[#allocation7 + $0x250] sm:$0xff] }
 0x19d   :  { %v1704_v62 = vpop.f32.mrf.mxu1 }
 0x19e   :  { %v1225_v62 = vld [vmem:[#allocation7 + $0x278] sm:$0xff] }
 0x1b7   :  { %v532_v63 = vpop.f32.mrf.mxu0 }
 0x1b8   :  { %v536_v6 = vadd.f32 %v532_v63, %v443_v5  ;;  %v1224_v63 = vld [vmem:[#allocation7 + $0x270] sm:$0xff]  ;;  %v1219_v5 = vld [vmem:[#allocation7 + $0x248] sm:$0xff] }
 0x1b9   :  { %v1739_v0 = vpop.f32.mrf.mxu0 }
 0x1ba   :  { %v1223_v0 = vld [vmem:[#allocation7 + $0x268] sm:$0xff] }
 0x1bd   :  { %v625_v1 = vpop.f32.mrf.mxu1 }
 0x1be   :  { %v629_v8 = vadd.f32 %v625_v1, %v536_v6  ;;  %v1222_v1 = vld [vmem:[#allocation7 + $0x260] sm:$0xff] }
 0x1bf   :  { %v1774_v3 = vpop.f32.mrf.mxu1  ;;  %v1218_v6 = vld [vmem:[#allocation7 + $0x240] sm:$0xff] }
 0x1c0   :  { %v1221_v3 = vld [vmem:[#allocation7 + $0x258] sm:$0xff] }
 0x1d9   :  { %v718_v7 = vpop.f32.mrf.mxu0 }
 0x1da   :  { %v722_v10 = vadd.f32 %v718_v7, %v629_v8  ;;  %v1217_v7 = vld [vmem:[#allocation7 + $0x238] sm:$0xff]  ;;  %v1216_v8 = vld [vmem:[#allocation7 + $0x230] sm:$0xff] }
 0x1db   :  { %v1809_v9 = vpop.f32.mrf.mxu0 }
 0x1dc   :  { %v1215_v9 = vld [vmem:[#allocation7 + $0x228] sm:$0xff] }
 0x1de   :  { %v811_v11 = vpop.f32.mrf.mxu1 }
 0x1df   :  { %v815_v13 = vadd.f32 %v811_v11, %v722_v10  ;;  %v1214_v10 = vld [vmem:[#allocation7 + $0x220] sm:$0xff] }
 0x1e0   :  { %v1844_v14 = vpop.f32.mrf.mxu1  ;;  %v1341_v11 = vld [vmem:[#allocation8 + $0x3] ss:$0 sm:$0xff] }
 0x1e1   :  { %v823_v15 = vadd.f32 %v1338_v12, %v815_v13 }
 0x1e3   :  { %v824_v16 = vmax.f32 %v823_v15, 0.0 }
 0x1e5   :  { %1878 = vmatmul.mubr.f32.vlgmr.msra.gmra.mxu0 %v824_v16  ;;  %v1213_v16 = vld [vmem:[#allocation7 + $0x218] sm:$0xff] }
 0x1e6   :  { %1947 = vmatprep.mubr.msk.f32.mxu0 %vm2168_vm0, %v2167_v2  ;;  %1916 = vmatpush3.msra.mxu0 %v1032_v20  ;;  %v1342_v20 = vld [vmem:[#allocation8 + $0x4] ss:$0 sm:$0xff] }
 0x1e7   :  { %1917 = vmatprep.subr.mxu0 %v2167_v2 }
 0x1e8   :  { %1918 = vmatpush3.msra.mxu0 %v1031_v21 }
 0x1e9   :  { %1919 = vmatprep.subr.mxu0 %v2167_v2 }
 0x1ea   :  { %1920 = vmatpush3.msra.mxu0 %v1030_v22 }
 0x1eb   :  { %1921 = vmatprep.subr.mxu0 %v2167_v2 }
 0x1ec   :  { %1922 = vmatpush3.msra.mxu0 %v1029_v23 }
 0x1ed   :  { %1923 = vmatprep.subr.mxu0 %v2167_v2 }
 0x1ee   :  { %1924 = vmatpush3.msra.mxu0 %v1028_v24 }
 0x1ef   :  { %1925 = vmatprep.subr.mxu0 %v2167_v2 }
 0x1f0   :  { %1926 = vmatpush3.msra.mxu0 %v1027_v25 }
 0x1f1   :  { %1927 = vmatprep.subr.mxu0 %v2167_v2 }
 0x1f2   :  { %1928 = vmatpush3.msra.mxu0 %v1026_v26  ;;  %v1343_v26 = vld [vmem:[#allocation8 + $0x5] ss:$0 sm:$0xff] }
 0x1f3   :  { %1929 = vmatprep.subr.mxu0 %v2167_v2 }
 0x1f4   :  { %1930 = vmatpush3.msra.mxu0 %v1025_v43 }
 0x1f5   :  { %1931 = vmatprep.subr.mxu0 %v2167_v2 }
 0x1f6   :  { %1932 = vmatpush3.msra.mxu0 %v1024_v27 }
 0x1f7   :  { %1933 = vmatprep.subr.mxu0 %v2167_v2 }
 0x1f8   :  { %1934 = vmatpush3.msra.mxu0 %v1023_v28 }
 0x1f9   :  { %1935 = vmatprep.subr.mxu0 %v2167_v2 }
 0x1fa   :  { %1936 = vmatpush3.msra.mxu0 %v1022_v46 }
 0x1fb   :  { %1937 = vmatprep.subr.mxu0 %v2167_v2 }
 0x1fc   :  { %1938 = vmatpush3.msra.mxu0 %v1021_v29 }
 0x1fd   :  { %1939 = vmatprep.subr.mxu0 %v2167_v2 }
 0x1fe   :  { %1940 = vmatpush3.msra.mxu0 %v1020_v30 }
 0x1ff   :  { %1941 = vmatprep.subr.mxu0 %v2167_v2 }
 0x200   :  { %1942 = vmatpush3.msra.mxu0 %v1019_v36 }
 0x201   :  { %1943 = vmatprep.subr.mxu0 %v2167_v2 }
 0x202   :  { %1944 = vmatpush3.msra.mxu0 %v1018_v37 }
 0x203   :  { %1945 = vmatprep.subr.mxu0 %v2167_v2 }
 0x204   :  { %1946 = vmatpush3.msra.mxu0 %v1017_v38 }
 0x205   :  { %1985 = vmatprep.subr.mxu0 %v2167_v2 }
 0x2a5   :  { %v915_v32 = vpop.f32.mrf.mxu0 }
 0x2a6   :  { %v2429_v33 = vadd.f32 %v1339_v31, %v915_v32 }
 0x2a7   :  { %v1879_v34 = vpop.f32.mrf.mxu0 }
 0x2a8   :  { %v919_v35 = vmax.f32 %v2429_v33, 0.0 }
 0x2aa   :  { %1913 = vmatmul.mubr.f32.vlgmr.msra.gmra.mxu1 %v919_v35 }
 0x2ab   :  { %1982 = vmatprep.mubr.msk.f32.mxu1 %vm2168_vm0, %v2167_v2  ;;  %1951 = vmatpush3.msra.mxu1 %v1128_v39 }
 0x2ac   :  { %1952 = vmatprep.subr.mxu1 %v2167_v2 }
 0x2ad   :  { %1953 = vmatpush3.msra.mxu1 %v1127_v40 }
 0x2ae   :  { %1954 = vmatprep.subr.mxu1 %v2167_v2 }
 0x2af   :  { %1955 = vmatpush3.msra.mxu1 %v1126_v41 }
 0x2b0   :  { %1956 = vmatprep.subr.mxu1 %v2167_v2 }
 0x2b1   :  { %1957 = vmatpush3.msra.mxu1 %v1125_v42 }
 0x2b2   :  { %1958 = vmatprep.subr.mxu1 %v2167_v2 }
 0x2b3   :  { %1959 = vmatpush3.msra.mxu1 %v1124_v44 }
 0x2b4   :  { %1960 = vmatprep.subr.mxu1 %v2167_v2 }
 0x2b5   :  { %1961 = vmatpush3.msra.mxu1 %v1123_v45 }
 0x2b6   :  { %1962 = vmatprep.subr.mxu1 %v2167_v2 }
 0x2b7   :  { %1963 = vmatpush3.msra.mxu1 %v1122_v47 }
 0x2b8   :  { %1964 = vmatprep.subr.mxu1 %v2167_v2 }
 0x2b9   :  { %1965 = vmatpush3.msra.mxu1 %v1121_v48 }
 0x2ba   :  { %1966 = vmatprep.subr.mxu1 %v2167_v2 }
 0x2bb   :  { %1967 = vmatpush3.msra.mxu1 %v1120_v49 }
 0x2bc   :  { %1968 = vmatprep.subr.mxu1 %v2167_v2 }
 0x2bd   :  { %1969 = vmatpush3.msra.mxu1 %v1119_v50 }
 0x2be   :  { %1970 = vmatprep.subr.mxu1 %v2167_v2 }
 0x2bf   :  { %1971 = vmatpush3.msra.mxu1 %v1118_v51 }
 0x2c0   :  { %1972 = vmatprep.subr.mxu1 %v2167_v2 }
 0x2c1   :  { %1973 = vmatpush3.msra.mxu1 %v1117_v52 }
 0x2c2   :  { %1974 = vmatprep.subr.mxu1 %v2167_v2 }
 0x2c3   :  { %1975 = vmatpush3.msra.mxu1 %v1116_v53 }
 0x2c4   :  { %1976 = vmatprep.subr.mxu1 %v2167_v2 }
 0x2c5   :  { %1977 = vmatpush3.msra.mxu1 %v1115_v59 }
 0x2c6   :  { %1978 = vmatprep.subr.mxu1 %v2167_v2 }
 0x2c7   :  { %1979 = vmatpush3.msra.mxu1 %v1114_v60 }
 0x2c8   :  { %1980 = vmatprep.subr.mxu1 %v2167_v2 }
 0x2c9   :  { %1981 = vmatpush3.msra.mxu1 %v1113_v61 }
 0x36a   :  { %v1011_v55 = vpop.f32.mrf.mxu1 }
 0x36b   :  { %v1012_v56 = vadd.f32 %v1340_v54, %v1011_v55 }
 0x36c   :  { %v1914_v57 = vpop.f32.mrf.mxu1 }
 0x36d   :  { %v1015_v58 = vmax.f32 %v1012_v56, 0.0 }
 0x36f   :  { %1948 = vmatmul.mubr.f32.vlgmr.msra.gmra.mxu0 %v1015_v58 }
 0x370   :  { %2017 = vmatprep.mubr.msk.f32.mxu0 %vm2168_vm0, %v2167_v2  ;;  %1986 = vmatpush3.msra.mxu0 %v1225_v62 }
 0x371   :  { %1987 = vmatprep.subr.mxu0 %v2167_v2 }
 0x372   :  { %1988 = vmatpush3.msra.mxu0 %v1224_v63 }
 0x373   :  { %1989 = vmatprep.subr.mxu0 %v2167_v2 }
 0x374   :  { %1990 = vmatpush3.msra.mxu0 %v1223_v0 }
 0x375   :  { %1991 = vmatprep.subr.mxu0 %v2167_v2 }
 0x376   :  { %1992 = vmatpush3.msra.mxu0 %v1222_v1 }
 0x377   :  { %1993 = vmatprep.subr.mxu0 %v2167_v2 }
 0x378   :  { %1994 = vmatpush3.msra.mxu0 %v1221_v3 }
 0x379   :  { %1995 = vmatprep.subr.mxu0 %v2167_v2 }
 0x37a   :  { %1996 = vmatpush3.msra.mxu0 %v1220_v4 }
 0x37b   :  { %1997 = vmatprep.subr.mxu0 %v2167_v2 }
 0x37c   :  { %1998 = vmatpush3.msra.mxu0 %v1219_v5 }
 0x37d   :  { %1999 = vmatprep.subr.mxu0 %v2167_v2 }
 0x37e   :  { %2000 = vmatpush3.msra.mxu0 %v1218_v6 }
 0x37f   :  { %2001 = vmatprep.subr.mxu0 %v2167_v2 }
 0x380   :  { %2002 = vmatpush3.msra.mxu0 %v1217_v7 }
 0x381   :  { %2003 = vmatprep.subr.mxu0 %v2167_v2 }
 0x382   :  { %2004 = vmatpush3.msra.mxu0 %v1216_v8 }
 0x383   :  { %2005 = vmatprep.subr.mxu0 %v2167_v2 }
 0x384   :  { %2006 = vmatpush3.msra.mxu0 %v1215_v9 }
 0x385   :  { %2007 = vmatprep.subr.mxu0 %v2167_v2 }
 0x386   :  { %2008 = vmatpush3.msra.mxu0 %v1214_v10 }
 0x387   :  { %2009 = vmatprep.subr.mxu0 %v2167_v2 }
 0x388   :  { %2010 = vmatpush3.msra.mxu0 %v1213_v16 }
 0x389   :  { %2011 = vmatprep.subr.mxu0 %v2167_v2 }
 0x38a   :  { %2012 = vmatpush3.msra.mxu0 %v1212_v17 }
 0x38b   :  { %2013 = vmatprep.subr.mxu0 %v2167_v2 }
 0x38c   :  { %2014 = vmatpush3.msra.mxu0 %v1211_v18 }
 0x38d   :  { %2015 = vmatprep.subr.mxu0 %v2167_v2 }
 0x38e   :  { %2016 = vmatpush3.msra.mxu0 %v1210_v19 }
 0x42f   :  { %v1107_v12 = vpop.f32.mrf.mxu0 }
 0x430   :  { %v1108_v13 = vadd.f32 %v1341_v11, %v1107_v12 }
 0x431   :  { %v1949_v14 = vpop.f32.mrf.mxu0 }
 0x432   :  { %v1111_v15 = vmax.f32 %v1108_v13, 0.0 }
 0x434   :  { %1983 = vmatmul.mubr.f32.vlgmr.msra.gmra.mxu1 %v1111_v15 }
 0x4f4   :  { %v1203_v21 = vpop.f32.mrf.mxu1 }
 0x4f5   :  { %v1204_v22 = vadd.f32 %v1342_v20, %v1203_v21 }
 0x4f6   :  { %v1984_v23 = vpop.f32.mrf.mxu1 }
 0x4f7   :  { %v1207_v24 = vadd.f32 %v1204_v22, %v2429_v33 }
 0x4f9   :  { %v1208_v25 = vmax.f32 %v1207_v24, 0.0 }
 0x4fb   :  { %2018 = vmatmul.mubr.f32.vlgmr.msra.gmra.mxu0 %v1208_v25 }
 0x5bb   :  { %v1300_v43 = vpop.f32.mrf.mxu0 }
 0x5bc   :  { %v1301_v27 = vadd.f32 %v1343_v26, %v1300_v43 }
 0x5bd   :  { %v2019_v28 = vpop.f32.mrf.mxu0 }
 0x5be   :  { %1304 = vst [vmem:[#allocation10] sm:$0xff] %v1301_v27 }
 0x5bf   :  { %2140 = shalt.err (!%p2137_p10)
}
 0x5c0   :  { %1314 = dma.vmem_to_hbm [thread:$0]  %s1312_s3, 128, %s2477_s4, [#allocation4]  }
 0x5c1   :  { %2155 = dma.done.wait [#allocation4], 128  }
 0x5c2   :  { %2156 = vsyncadd [#allocation4], 4294967168 }
 0x5c3   :  { %1318 = vsyncpa [#allocation3], 1 }
 0x5c4   :  { %1319 = vsyncpa [#allocation6], 1 }
 0x5c5   :  { %1320 = vsyncpa [#allocation9], 1 }
 0x5c6   :  { %1321 = vsyncpa [#allocation4], 1 }

</bundles_post_ra>
